<compile_context>
chip_gen: v6e
topology: v6e:2x2x1
jax: 0.10.0
libtpu: 0.0.40
codegen_flags: <defaults>
</compile_context>

<pallas_src>
import functools

import jax
import jax.numpy as jnp
from jax.experimental import pallas as pl
from jax.experimental.pallas import tpu as pltpu

_NEG_INF = -1e30  # finite "minus infinity" -> no inf-inf NaN hazards


def _pam_flash_kernel(xq_ref, xkv_ref, wq_ref, bq_ref, wkv_ref, bkv_ref,
                      gamma_ref, o_ref, q_scr, m_scr, l_scr, acc_scr,
                      *, cq, n_valid, tile, mask_kv):
    """One (batch, q_tile, kv_tile) grid step of PAM attention.

    xq_ref:  (1, T, C)   query-side rows of x
    xkv_ref: (1, T, C)   key/value-side rows of x
    wq_ref:  (C, Cq)     bf16, pre-transposed query projection
    wkv_ref: (C, Cq+C)   bf16, fused [key | value] projection
    gamma_ref: (1,)      f32 scalar in SMEM
    scratch: q (T,Cq) bf16, running max/sum (T,1) f32, accumulator (T,C) f32
    """
    ki = pl.program_id(2)

    @pl.when(ki == 0)
    def _init():
        xq = xq_ref[0].astype(jnp.bfloat16)                       # (T, C)
        q = jnp.dot(xq, wq_ref[...],
                    preferred_element_type=jnp.float32) + bq_ref[...]
        q_scr[...] = q.astype(jnp.bfloat16)                       # (T, Cq)
        m_scr[...] = jnp.full(m_scr.shape, _NEG_INF, jnp.float32)
        l_scr[...] = jnp.zeros(l_scr.shape, jnp.float32)
        acc_scr[...] = jnp.zeros(acc_scr.shape, jnp.float32)

    # Fused key/value projection for the current kv tile.
    xkv = xkv_ref[0].astype(jnp.bfloat16)                         # (T, C)
    kv = jnp.dot(xkv, wkv_ref[...],
                 preferred_element_type=jnp.float32) + bkv_ref[...]
    k = kv[:, :cq].astype(jnp.bfloat16)                           # (T, Cq)
    v = kv[:, cq:].astype(jnp.bfloat16)                           # (T, C)

    # energy[i, j] = q_i . k_j ; contract last axes of both (no transpose).
    s = jax.lax.dot_general(q_scr[...], k, (((1,), (1,)), ((), ())),
                            preferred_element_type=jnp.float32)   # (T, T)

    if mask_kv:  # static branch: only emitted when N was padded
        col = ki * tile + jax.lax.broadcasted_iota(jnp.int32, s.shape, 1)
        s = jnp.where(col < n_valid, s, _NEG_INF)

    # Online softmax update.
    m_prev = m_scr[...]
    m_new = jnp.maximum(m_prev, jnp.max(s, axis=-1, keepdims=True))
    alpha = jnp.exp(m_prev - m_new)
    p = jnp.exp(s - m_new)
    l_scr[...] = alpha * l_scr[...] + jnp.sum(p, axis=-1, keepdims=True)
    acc_scr[...] = alpha * acc_scr[...] + jnp.dot(
        p.astype(jnp.bfloat16), v, preferred_element_type=jnp.float32)
    m_scr[...] = m_new

    @pl.when(ki == pl.num_programs(2) - 1)
    def _finalize():
        inv_l = pl.reciprocal(l_scr[...], approx=True)            # EUP, per q-tile
        out = acc_scr[...] * inv_l                                # (T, C)
        o_ref[0] = gamma_ref[0] * out + xq_ref[0]                 # residual


def pam_forward(x_nchw, wq, bq, wk, bk, wv, bv, gamma, *, tile=128):
    """x_nchw: (B, C, H, W) float32. Returns (B, C, H, W)."""
    B, C, H, W = x_nchw.shape
    N = H * W
    Cq = wq.shape[0]

    # Tile size: multiple of 8 sublanes, capped at `tile`; pad N to a multiple.
    t = min(tile, N)
    t = max(8, ((t + 7) // 8) * 8)
    n_tiles = (N + t - 1) // t
    n_pad = n_tiles * t

    # NCHW -> (B, N, C)
    x_bnc = jnp.transpose(x_nchw.reshape(B, C, N), (0, 2, 1)).astype(jnp.float32)
    if n_pad != N:
        x_bnc = jnp.pad(x_bnc, ((0, 0), (0, n_pad - N), (0, 0)))

    # Pre-transposed bf16 projection weights; K and V projections fused.
    wq_t = jnp.asarray(wq, jnp.float32).T.astype(jnp.bfloat16)            # (C, Cq)
    wkv_t = jnp.concatenate(
        [jnp.asarray(wk, jnp.float32).T, jnp.asarray(wv, jnp.float32).T],
        axis=1).astype(jnp.bfloat16)                                      # (C, Cq+C)
    bq2 = jnp.asarray(bq, jnp.float32).reshape(1, Cq)
    bkv2 = jnp.concatenate(
        [jnp.asarray(bk, jnp.float32), jnp.asarray(bv, jnp.float32)]
    ).reshape(1, Cq + C)
    gamma1 = jnp.reshape(jnp.asarray(gamma, jnp.float32), (1,))

    kernel = functools.partial(_pam_flash_kernel, cq=Cq, n_valid=N,
                               tile=t, mask_kv=(n_pad != N))

    out_bnc = pl.pallas_call(
        kernel,
        out_shape=jax.ShapeDtypeStruct((B, n_pad, C), jnp.float32),
        grid_spec=pltpu.PrefetchScalarGridSpec(
            num_scalar_prefetch=0,
            grid=(B, n_tiles, n_tiles),
            in_specs=[
                pl.BlockSpec((1, t, C), lambda b, qi, ki: (b, qi, 0)),   # x (q rows)
                pl.BlockSpec((1, t, C), lambda b, qi, ki: (b, ki, 0)),   # x (kv rows)
                pl.BlockSpec((C, Cq), lambda b, qi, ki: (0, 0)),         # Wq^T
                pl.BlockSpec((1, Cq), lambda b, qi, ki: (0, 0)),         # bq
                pl.BlockSpec((C, Cq + C), lambda b, qi, ki: (0, 0)),     # [Wk|Wv]^T
                pl.BlockSpec((1, Cq + C), lambda b, qi, ki: (0, 0)),     # [bk|bv]
                pl.BlockSpec(memory_space=pltpu.MemorySpace.SMEM),       # gamma
            ],
            out_specs=pl.BlockSpec((1, t, C), lambda b, qi, ki: (b, qi, 0)),
            scratch_shapes=[
                pltpu.VMEM((t, Cq), jnp.bfloat16),   # cached q tile
                pltpu.VMEM((t, 1), jnp.float32),     # running max
                pltpu.VMEM((t, 1), jnp.float32),     # running sum
                pltpu.VMEM((t, C), jnp.float32),     # output accumulator
            ],
        ),
        compiler_params=pltpu.CompilerParams(
            dimension_semantics=("parallel", "parallel", "arbitrary")),
    )(x_bnc, x_bnc, wq_t, bq2, wkv_t, bkv2, gamma1)

    out_bnc = out_bnc[:, :N, :]
    # (B, N, C) -> NCHW
    return jnp.transpose(out_bnc, (0, 2, 1)).reshape(B, C, H, W)


def pam_reference(x_nchw, wq, bq, wk, bk, wv, bv, gamma):
    """Pure-JAX f32 reference mirroring the PyTorch forward (NCHW)."""
    B, C, H, W = x_nchw.shape
    N = H * W

    def conv1x1(x, w, b):  # w: (Cout, Cin), 1x1 conv
        return jnp.einsum('bchw,oc->bohw', x, w) + b[None, :, None, None]

    q = conv1x1(x_nchw, wq, bq).reshape(B, -1, N).transpose(0, 2, 1)  # (B, N, Cq)
    k = conv1x1(x_nchw, wk, bk).reshape(B, -1, N)                     # (B, Cq, N)
    energy = jnp.einsum('bnc,bcm->bnm', q, k)                         # (B, N, N)
    attention = jax.nn.softmax(energy, axis=-1)
    v = conv1x1(x_nchw, wv, bv).reshape(B, -1, N)                     # (B, C, N)
    out = jnp.einsum('bcn,bmn->bcm', v, attention).reshape(B, C, H, W)
    return gamma * out + x_nchw


if __name__ == "__main__":
    B, C, H, W = 2, 8, 16, 16
    Cq = C // 4

    key = jax.random.PRNGKey(0)
    kx, k1, k2, k3, k4, k5, k6 = jax.random.split(key, 7)

    x = jax.random.normal(kx, (B, C, H, W), dtype=jnp.float32)

    # Conv2d(in_dim, in_dim//4, 1) / Conv2d(in_dim, in_dim, 1) parameter shapes.
    # gamma is initialized to 0.0 in the module; use a nonzero value so the
    # attention path is actually exercised.
    wq = jax.random.normal(k1, (Cq, C), dtype=jnp.float32) * 0.1
    bq = jax.random.normal(k2, (Cq,), dtype=jnp.float32) * 0.1
    wk = jax.random.normal(k3, (Cq, C), dtype=jnp.float32) * 0.1
    bk = jax.random.normal(k4, (Cq,), dtype=jnp.float32) * 0.1
    wv = jax.random.normal(k5, (C, C), dtype=jnp.float32) * 0.1
    bv = jax.random.normal(k6, (C,), dtype=jnp.float32) * 0.1
    gamma = jnp.float32(0.5)

    out = pam_forward(x, wq, bq, wk, bk, wv, bv, gamma)
    out = jax.block_until_ready(out)

    ref = pam_reference(x, wq, bq, wk, bk, wv, bv, gamma)
    assert out.shape == (B, C, H, W)
    # bf16 MXU inputs with f32 accumulation -> looser tolerance than pure f32.
    assert jnp.allclose(out, ref, atol=2e-2, rtol=2e-2), (
        "mismatch vs reference: max abs diff = %e"
        % float(jnp.max(jnp.abs(out - ref))))

    print("KERNEL_OK")
</pallas_src>

<mosaic_0001>
module attributes {stable_mosaic.version = 11 : i64} {
  func.func @_pam_flash_kernel(%arg0: i32, %arg1: i32, %arg2: i32, %arg3: memref<1x128x8xf32, #tpu.memory_space<vmem>>, %arg4: memref<1x128x8xf32, #tpu.memory_space<vmem>>, %arg5: memref<8x2xbf16, #tpu.memory_space<vmem>>, %arg6: memref<1x2xf32, #tpu.memory_space<vmem>>, %arg7: memref<8x10xbf16, #tpu.memory_space<vmem>>, %arg8: memref<1x10xf32, #tpu.memory_space<vmem>>, %arg9: memref<1xf32, #tpu.memory_space<smem>>, %arg10: memref<1x128x8xf32, #tpu.memory_space<vmem>>, %arg11: memref<128x2xbf16, #tpu.memory_space<vmem>>, %arg12: memref<128x1xf32, #tpu.memory_space<vmem>>, %arg13: memref<128x1xf32, #tpu.memory_space<vmem>>, %arg14: memref<128x8xf32, #tpu.memory_space<vmem>>) attributes {dimension_semantics = [#tpu.dimension_semantics<parallel>, #tpu.dimension_semantics<parallel>, #tpu.dimension_semantics<arbitrary>], iteration_bounds = array<i64: 2, 2, 2>, scalar_prefetch = 0 : i64, scratch_operands = 4 : i64, tpu.core_type = #tpu.core_type<tc>, window_params = [{transform_indices = @transform_0, window_bounds = array<i64: 1, 128, 8>}, {transform_indices = @transform_1, window_bounds = array<i64: 1, 128, 8>}, {pipeline_mode = #tpu.pipeline_mode<synchronous>, transform_indices = @transform_2, window_bounds = array<i64: 8, 2>}, {pipeline_mode = #tpu.pipeline_mode<synchronous>, transform_indices = @transform_3, window_bounds = array<i64: 1, 2>}, {pipeline_mode = #tpu.pipeline_mode<synchronous>, transform_indices = @transform_4, window_bounds = array<i64: 8, 10>}, {pipeline_mode = #tpu.pipeline_mode<synchronous>, transform_indices = @transform_5, window_bounds = array<i64: 1, 10>}, {transform_indices = @transform_6, window_bounds = array<i64: 1>}, {transform_indices = @transform_7, window_bounds = array<i64: 1, 128, 8>}]} {
    %c0_i32 = arith.constant 0 : i32
    %0 = arith.cmpi eq, %arg2, %c0_i32 : i32
    %1 = arith.extui %0 : i1 to i32
    %c0_i32_0 = arith.constant 0 : i32
    %2 = arith.cmpi ne, %1, %c0_i32_0 : i32
    scf.if %2 {
      %c0_26 = arith.constant 0 : index
      %c0_27 = arith.constant 0 : index
      %c0_28 = arith.constant 0 : index
      %43 = vector.load %arg3[%c0_26, %c0_27, %c0_28] : memref<1x128x8xf32, #tpu.memory_space<vmem>>, vector<1x128x8xf32>
      %44 = vector.shape_cast %43 : vector<1x128x8xf32> to vector<128x8xf32>
      %45 = arith.truncf %44 : vector<128x8xf32> to vector<128x8xbf16>
      %c0_29 = arith.constant 0 : index
      %c0_30 = arith.constant 0 : index
      %46 = vector.load %arg5[%c0_29, %c0_30] : memref<8x2xbf16, #tpu.memory_space<vmem>>, vector<8x2xbf16>
      %cst_31 = arith.constant dense<0.000000e+00> : vector<128x2xf32>
      %47 = tpu.matmul %45, %46, %cst_31 {dimension_numbers = #tpu.dot_dimension_numbers<[1], [0], [0], [1], [0, 0, 1, 1], [], []>} : vector<128x8xbf16>, vector<8x2xbf16>, vector<128x2xf32> -> vector<128x2xf32>
      %c0_32 = arith.constant 0 : index
      %c0_33 = arith.constant 0 : index
      %48 = vector.load %arg6[%c0_32, %c0_33] : memref<1x2xf32, #tpu.memory_space<vmem>>, vector<1x2xf32>
      %49 = vector.broadcast %48 : vector<1x2xf32> to vector<128x2xf32>
      %50 = arith.addf %47, %49 : vector<128x2xf32>
      %51 = arith.truncf %50 : vector<128x2xf32> to vector<128x2xbf16>
      %c0_34 = arith.constant 0 : index
      %c0_35 = arith.constant 0 : index
      %52 = vector.load %arg11[%c0_34, %c0_35] : memref<128x2xbf16, #tpu.memory_space<vmem>>, vector<128x2xbf16>
      tpu.vector_store %arg11[%c0_34, %c0_35], %51 {strides = array<i32>} : memref<128x2xbf16, #tpu.memory_space<vmem>>, vector<128x2xbf16>,
      %cst_36 = arith.constant -1.000000e+30 : f32
      %53 = vector.broadcast %cst_36 : f32 to vector<128x1xf32>
      %c0_37 = arith.constant 0 : index
      %c0_38 = arith.constant 0 : index
      %54 = vector.load %arg12[%c0_37, %c0_38] : memref<128x1xf32, #tpu.memory_space<vmem>>, vector<128x1xf32>
      tpu.vector_store %arg12[%c0_37, %c0_38], %53 {strides = array<i32>} : memref<128x1xf32, #tpu.memory_space<vmem>>, vector<128x1xf32>,
      %cst_39 = arith.constant 0.000000e+00 : f32
      %55 = vector.broadcast %cst_39 : f32 to vector<128x1xf32>
      %c0_40 = arith.constant 0 : index
      %c0_41 = arith.constant 0 : index
      %56 = vector.load %arg13[%c0_40, %c0_41] : memref<128x1xf32, #tpu.memory_space<vmem>>, vector<128x1xf32>
      tpu.vector_store %arg13[%c0_40, %c0_41], %55 {strides = array<i32>} : memref<128x1xf32, #tpu.memory_space<vmem>>, vector<128x1xf32>,
      %cst_42 = arith.constant 0.000000e+00 : f32
      %57 = vector.broadcast %cst_42 : f32 to vector<128x8xf32>
      %c0_43 = arith.constant 0 : index
      %c0_44 = arith.constant 0 : index
      %58 = vector.load %arg14[%c0_43, %c0_44] : memref<128x8xf32, #tpu.memory_space<vmem>>, vector<128x8xf32>
      tpu.vector_store %arg14[%c0_43, %c0_44], %57 {strides = array<i32>} : memref<128x8xf32, #tpu.memory_space<vmem>>, vector<128x8xf32>,
    } else {
    }
    %c0 = arith.constant 0 : index
    %c0_1 = arith.constant 0 : index
    %c0_2 = arith.constant 0 : index
    %3 = vector.load %arg4[%c0, %c0_1, %c0_2] : memref<1x128x8xf32, #tpu.memory_space<vmem>>, vector<1x128x8xf32>
    %4 = vector.shape_cast %3 : vector<1x128x8xf32> to vector<128x8xf32>
    %5 = arith.truncf %4 : vector<128x8xf32> to vector<128x8xbf16>
    %c0_3 = arith.constant 0 : index
    %c0_4 = arith.constant 0 : index
    %6 = vector.load %arg7[%c0_3, %c0_4] : memref<8x10xbf16, #tpu.memory_space<vmem>>, vector<8x10xbf16>
    %cst = arith.constant dense<0.000000e+00> : vector<128x10xf32>
    %7 = tpu.matmul %5, %6, %cst {dimension_numbers = #tpu.dot_dimension_numbers<[1], [0], [0], [1], [0, 0, 1, 1], [], []>} : vector<128x8xbf16>, vector<8x10xbf16>, vector<128x10xf32> -> vector<128x10xf32>
    %c0_5 = arith.constant 0 : index
    %c0_6 = arith.constant 0 : index
    %8 = vector.load %arg8[%c0_5, %c0_6] : memref<1x10xf32, #tpu.memory_space<vmem>>, vector<1x10xf32>
    %9 = vector.broadcast %8 : vector<1x10xf32> to vector<128x10xf32>
    %10 = arith.addf %7, %9 : vector<128x10xf32>
    %11 = vector.extract_strided_slice %10 {offsets = [0, 0], sizes = [128, 2], strides = [1, 1]} : vector<128x10xf32> to vector<128x2xf32>
    %12 = arith.truncf %11 : vector<128x2xf32> to vector<128x2xbf16>
    %13 = vector.extract_strided_slice %10 {offsets = [0, 2], sizes = [128, 8], strides = [1, 1]} : vector<128x10xf32> to vector<128x8xf32>
    %14 = arith.truncf %13 : vector<128x8xf32> to vector<128x8xbf16>
    %c0_7 = arith.constant 0 : index
    %c0_8 = arith.constant 0 : index
    %15 = vector.load %arg11[%c0_7, %c0_8] : memref<128x2xbf16, #tpu.memory_space<vmem>>, vector<128x2xbf16>
    %cst_9 = arith.constant dense<0.000000e+00> : vector<128x128xf32>
    %16 = tpu.matmul %15, %12, %cst_9 {dimension_numbers = #tpu.dot_dimension_numbers<[1], [1], [0], [0], [0, 0, 1, 0], [], []>} : vector<128x2xbf16>, vector<128x2xbf16>, vector<128x128xf32> -> vector<128x128xf32>
    %c0_10 = arith.constant 0 : index
    %c0_11 = arith.constant 0 : index
    %17 = vector.load %arg12[%c0_10, %c0_11] : memref<128x1xf32, #tpu.memory_space<vmem>>, vector<128x1xf32>
    %cst_12 = arith.constant dense<0xFF800000> : vector<128xf32>
    %18 = vector.multi_reduction <maximumf>, %16, %cst_12 [1] : vector<128x128xf32> to vector<128xf32>
    %19 = vector.shape_cast %18 : vector<128xf32> to vector<128x1xf32>
    %20 = arith.maximumf %17, %19 : vector<128x1xf32>
    %21 = arith.subf %17, %20 : vector<128x1xf32>
    %22 = math.exp %21 : vector<128x1xf32>
    %23 = vector.broadcast %20 : vector<128x1xf32> to vector<128x128xf32>
    %24 = arith.subf %16, %23 : vector<128x128xf32>
    %25 = math.exp %24 : vector<128x128xf32>
    %c0_13 = arith.constant 0 : index
    %c0_14 = arith.constant 0 : index
    %26 = vector.load %arg13[%c0_13, %c0_14] : memref<128x1xf32, #tpu.memory_space<vmem>>, vector<128x1xf32>
    %27 = arith.mulf %22, %26 : vector<128x1xf32>
    %cst_15 = arith.constant dense<0.000000e+00> : vector<128xf32>
    %28 = vector.multi_reduction <add>, %25, %cst_15 [1] : vector<128x128xf32> to vector<128xf32>
    %29 = vector.shape_cast %28 : vector<128xf32> to vector<128x1xf32>
    %30 = arith.addf %27, %29 : vector<128x1xf32>
    %c0_16 = arith.constant 0 : index
    %c0_17 = arith.constant 0 : index
    %31 = vector.load %arg13[%c0_16, %c0_17] : memref<128x1xf32, #tpu.memory_space<vmem>>, vector<128x1xf32>
    tpu.vector_store %arg13[%c0_16, %c0_17], %30 {strides = array<i32>} : memref<128x1xf32, #tpu.memory_space<vmem>>, vector<128x1xf32>,
    %c0_18 = arith.constant 0 : index
    %c0_19 = arith.constant 0 : index
    %32 = vector.load %arg14[%c0_18, %c0_19] : memref<128x8xf32, #tpu.memory_space<vmem>>, vector<128x8xf32>
    %33 = vector.broadcast %22 : vector<128x1xf32> to vector<128x8xf32>
    %34 = arith.mulf %33, %32 : vector<128x8xf32>
    %35 = arith.truncf %25 : vector<128x128xf32> to vector<128x128xbf16>
    %cst_20 = arith.constant dense<0.000000e+00> : vector<128x8xf32>
    %36 = tpu.matmul %35, %14, %cst_20 {dimension_numbers = #tpu.dot_dimension_numbers<[1], [0], [0], [1], [0, 0, 1, 1], [], []>} : vector<128x128xbf16>, vector<128x8xbf16>, vector<128x8xf32> -> vector<128x8xf32>
    %37 = arith.addf %34, %36 : vector<128x8xf32>
    %c0_21 = arith.constant 0 : index
    %c0_22 = arith.constant 0 : index
    %38 = vector.load %arg14[%c0_21, %c0_22] : memref<128x8xf32, #tpu.memory_space<vmem>>, vector<128x8xf32>
    tpu.vector_store %arg14[%c0_21, %c0_22], %37 {strides = array<i32>} : memref<128x8xf32, #tpu.memory_space<vmem>>, vector<128x8xf32>,
    %c0_23 = arith.constant 0 : index
    %c0_24 = arith.constant 0 : index
    %39 = vector.load %arg12[%c0_23, %c0_24] : memref<128x1xf32, #tpu.memory_space<vmem>>, vector<128x1xf32>
    tpu.vector_store %arg12[%c0_23, %c0_24], %20 {strides = array<i32>} : memref<128x1xf32, #tpu.memory_space<vmem>>, vector<128x1xf32>,
    %c1_i32 = arith.constant 1 : i32
    %40 = arith.cmpi eq, %arg2, %c1_i32 : i32
    %41 = arith.extui %40 : i1 to i32
    %c0_i32_25 = arith.constant 0 : i32
    %42 = arith.cmpi ne, %41, %c0_i32_25 : i32
    scf.if %42 {
      %c0_26 = arith.constant 0 : index
      %c0_27 = arith.constant 0 : index
      %43 = vector.load %arg13[%c0_26, %c0_27] : memref<128x1xf32, #tpu.memory_space<vmem>>, vector<128x1xf32>
      %44 = tpu.reciprocal %43 {approx = true} : vector<128x1xf32> -> vector<128x1xf32>
      %c0_28 = arith.constant 0 : index
      %c0_29 = arith.constant 0 : index
      %45 = vector.load %arg14[%c0_28, %c0_29] : memref<128x8xf32, #tpu.memory_space<vmem>>, vector<128x8xf32>
      %46 = vector.broadcast %44 : vector<128x1xf32> to vector<128x8xf32>
      %47 = arith.mulf %45, %46 : vector<128x8xf32>
      %c0_30 = arith.constant 0 : index
      %48 = memref.load %arg9[%c0_30] : memref<1xf32, #tpu.memory_space<smem>>
      %49 = vector.broadcast %48 : f32 to vector<128x8xf32>
      %50 = arith.mulf %49, %47 : vector<128x8xf32>
      %c0_31 = arith.constant 0 : index
      %c0_32 = arith.constant 0 : index
      %c0_33 = arith.constant 0 : index
      %51 = vector.load %arg3[%c0_31, %c0_32, %c0_33] : memref<1x128x8xf32, #tpu.memory_space<vmem>>, vector<1x128x8xf32>
      %52 = vector.shape_cast %51 : vector<1x128x8xf32> to vector<128x8xf32>
      %53 = arith.addf %50, %52 : vector<128x8xf32>
      %c0_34 = arith.constant 0 : index
      %c0_35 = arith.constant 0 : index
      %c0_36 = arith.constant 0 : index
      %54 = vector.load %arg10[%c0_34, %c0_35, %c0_36] : memref<1x128x8xf32, #tpu.memory_space<vmem>>, vector<1x128x8xf32>
      %55 = vector.shape_cast %54 : vector<1x128x8xf32> to vector<128x8xf32>
      %56 = vector.shape_cast %53 : vector<128x8xf32> to vector<1x128x8xf32>
      tpu.vector_store %arg10[%c0_34, %c0_35, %c0_36], %56 {strides = array<i32>} : memref<1x128x8xf32, #tpu.memory_space<vmem>>, vector<1x128x8xf32>,
    } else {
    }
    return
  }
  func.func @transform_0(%arg0: i32, %arg1: i32, %arg2: i32) -> (i32, i32, i32) {
    %c0_i32 = arith.constant 0 : i32
    %c0_i32_0 = arith.constant 0 : i32
    return %arg0, %arg1, %c0_i32 : i32, i32, i32
  }
  func.func @transform_1(%arg0: i32, %arg1: i32, %arg2: i32) -> (i32, i32, i32) {
    %c0_i32 = arith.constant 0 : i32
    %c0_i32_0 = arith.constant 0 : i32
    return %arg0, %arg2, %c0_i32 : i32, i32, i32
  }
  func.func @transform_2(%arg0: i32, %arg1: i32, %arg2: i32) -> (i32, i32) {
    %c0_i32 = arith.constant 0 : i32
    %c0_i32_0 = arith.constant 0 : i32
    %c0_i32_1 = arith.constant 0 : i32
    return %c0_i32, %c0_i32_0 : i32, i32
  }
  func.func @transform_3(%arg0: i32, %arg1: i32, %arg2: i32) -> (i32, i32) {
    %c0_i32 = arith.constant 0 : i32
    %c0_i32_0 = arith.constant 0 : i32
    %c0_i32_1 = arith.constant 0 : i32
    return %c0_i32, %c0_i32_0 : i32, i32
  }
  func.func @transform_4(%arg0: i32, %arg1: i32, %arg2: i32) -> (i32, i32) {
    %c0_i32 = arith.constant 0 : i32
    %c0_i32_0 = arith.constant 0 : i32
    %c0_i32_1 = arith.constant 0 : i32
    return %c0_i32, %c0_i32_0 : i32, i32
  }
  func.func @transform_5(%arg0: i32, %arg1: i32, %arg2: i32) -> (i32, i32) {
    %c0_i32 = arith.constant 0 : i32
    %c0_i32_0 = arith.constant 0 : i32
    %c0_i32_1 = arith.constant 0 : i32
    return %c0_i32, %c0_i32_0 : i32, i32
  }
  func.func @transform_6(%arg0: i32, %arg1: i32, %arg2: i32) -> i32 {
    %c0_i32 = arith.constant 0 : i32
    %c0_i32_0 = arith.constant 0 : i32
    return %c0_i32 : i32
  }
  func.func @transform_7(%arg0: i32, %arg1: i32, %arg2: i32) -> (i32, i32, i32) {
    %c0_i32 = arith.constant 0 : i32
    %c0_i32_0 = arith.constant 0 : i32
    return %arg0, %arg1, %c0_i32 : i32, i32, i32
  }
}

</mosaic_0001>

<bundles_post_ra>
// kernel: tpu_custom_call.1
= control target key start
LH: loop header
LB: loop body
LE: loop exit
PB: predicated region body
PF: predicated region fallthrough
CT: control target
= control target key end

     0   :  { %s2505_s26 = smov 0   ;;  %s2507_s27 = smov 0   ;;  %s3202_s0 = inlined_call_operand.vmem [shape: f32[2,256,8], index: 0, kind: input, shape index: {}]   ;;  %s3203_s1 = inlined_call_operand.vmem [shape: f32[2,256,8], index: 1, kind: input, shape index: {}]   ;;  %s3204_s2 = inlined_call_operand.vmem [shape: bf16[8,2], index: 2, kind: input, shape index: {}]   ;;  %s3205_s3 = inlined_call_operand.vmem [shape: f32[1,2], index: 3, kind: input, shape index: {}]   ;;  %s3206_s4 = inlined_call_operand.vmem [shape: bf16[8,10], index: 4, kind: input, shape index: {}]   ;;  %s3207_s5 = inlined_call_operand.vmem [shape: f32[1,10], index: 5, kind: input, shape index: {}]   ;;  %s3208_s6 = inlined_call_operand.<no memory space> [shape: f32[1], index: 6, kind: input, shape index: {}]   ;;  %s3209_s7 = inlined_call_operand.vmem [shape: f32[2,256,8], index: 7, kind: output, shape index: {}]  }
   0x1   :  { %12 = sst [smem:[#allocation6]] %s3208_s6  ;;  %s2509_s28 = smov 0  }
   0x2   :  { %s2511_s29 = smov 0   ;;  %s2513_s30 = smov 0  }
   0x3   :  { %s2515_s8 = smov 0   ;;  %s2517_s9 = smov 0  }
   0x4 LB: > { %s30_s6 = sadd.s32 1, %s2443_s29  ;;  %s33_s10 = sadd.s32 1, %s2447_s30  ;;  %s2455_s9 = sphi %s2517_s9, %s18_s9   ;;  %s2451_s8 = sphi %s2515_s8, %s3215_s8   ;;  %s2447_s30 = sphi %s2513_s30, %s3214_s30   ;;  %s2443_s29 = sphi %s2511_s29, %s3213_s29   ;;  %s2439_s28 = sphi %s2509_s28, %s3212_s28   ;;  %s2435_s27 = sphi %s2507_s27, %s3211_s27   ;;  %s2431_s26 = sphi %s2505_s26, %s3210_s26  }
   0x5   : > { %p31_p0 = scmp.ge.s32.totalorder %s30_s6, 2  ;;  %p1989_p1 = scmp.ge.s32.totalorder %s2455_s9, 1 }
   0x6   : > { %p283_p2 = scmp.lt.s32.totalorder %s2455_s9, 9  ;;  %s37_s11 = sadd.s32 1, %s2451_s8 }
   0x7   : > { %s3217_s6 = smov (%p31_p0, %s30_s6), 0  ;;  %s3219_s10 = smov (!%p31_p0, %s33_s10), %s2447_s30 }
   0x8   : > { %p284_p3 = pnand %p1989_p1, %p283_p2  ;;  %p35_p4 = scmp.ge.s32.totalorder %s3219_s10, 2 }
   0x9   : > { %s1990_s12 = sshll.u32 (!%p284_p3), %s2435_s27, 4  ;;  %p333_p6 = scmp.lt.s32.totalorder (!%p284_p3), %s2439_s28, 1 }
   0xa   : > { %s3221_s10 = smov (%p35_p4, %s3219_s10), 0  ;;  %s3223_s11 = smov (!%p35_p4, %s37_s11), %s2451_s8 }
   0xb   : > { %p39_p5 = scmp.ge.s32.totalorder %s3223_s11, 2  ;;  %287 = sbr.rel (%p284_p3) target bundleno = 1481 (0x5c9), region = 48 }
   0xc   : > { %p335_p7 = scmp.lt.s32.totalorder (!%p284_p3), %s1990_s12, 31  ;;  %s1993_s13 = sshll.u32 (!%p284_p3), %s2431_s26, 4 }
   0xd   : > { %s3225_s11 = smov (%p39_p5, %s3223_s11), 0  ;;  %p345_p8 = scmp.lt.s32.totalorder (!%p284_p3), %s1993_s13, 31 }
   0xe   : > { %p1999_p9 = scmp.ne.s32.totalorder (!%p284_p3), %s2431_s26, 0 }
  0x10   : > { %s3227_s28 = smov (!%p333_p6, %s2439_s28), 1  ;;  %s3229_s12 = smov (!%p335_p7, %s1990_s12), 31 }
  0x11   : > { %s1991_s14 = sshll.u32 %s3227_s28, 5  ;;  %s3231_s13 = smov (!%p345_p8, %s1993_s13), 31 }
  0x12   : > { %s338_s15 = sadd.s32 %s1991_s14, %s3229_s12  ;;  %s348_s23 = sadd.s32 %s1991_s14, %s3231_s13 }
  0x13   : > { %s1992_s16 = sshll.u32 %s338_s15, 3  ;;  %s1995_s24 = sshll.u32 %s348_s23, 3 }
  0x14   : > { %s2553_s19 = scalar_lea.vmem %s3202_s0, %s1992_s16  ;;  %s2558_s22 = scalar_lea.vmem %s3209_s7, %s1992_s16 }
  0x15   : > { %s2563_s28 = scalar_lea.vmem %s3203_s1, %s1995_s24  ;;  %366 = sbr.rel (%p1999_p9) target bundleno = 244 (0xf4), region = 52 }
  0x1a   : > { %v391_v0 = vld [vmem:[%s3204_s2] sm:$0xf]  ;;  %vm424_vm0 = vcmask 1043456   ;;  %v368_v2 = vld [vmem:[%s2553_s19 + $0x8] sm:$0xff]  ;;  %vm399_vm1 = vcmask 64512   ;;  %vm606_vm2 = vcmask 7168  }
  0x1b   : > { %v367_v1 = vld [vmem:[%s2553_s19] sm:$0xff]  ;;  %2221 = vmatprep.subr.msk.bf16.mxu0 %vm424_vm0, %v391_v0  ;;  %2222 = vmatprep.subr.msk.bf16.mxu1 %vm424_vm0, %v391_v0  ;;  %v426_v3 = vsel %vm424_vm0, %v391_v0, 0  ;;  %v2575_v6 = vld [vmem:[%s2553_s19 + $0x48] sm:$0xff]  ;;  %v2457_v7 = vmov -1e+30   ;;  %v369_v9 = vld [vmem:[%s2553_s19 + $0x10] sm:$0xff] }
  0x1c   : > { %v383_v4 = vpack.c.bf16 %v368_v2, %v367_v1  ;;  %v2572_v5 = vld [vmem:[%s2553_s19 + $0x40] sm:$0xff]  ;;  %2120 = vmatpush3.bf16.msra.mxu0 %v426_v3  ;;  %2220 = vmatpush3.bf16.msra.mxu1 %v426_v3  ;;  %607 = vst.msk [vmem:[#allocation3] sm:$0xff] %vm606_vm2, %v2457_v7  ;;  %608 = vst.msk [vmem:[#allocation3 + $0x8] sm:$0xff] %vm606_vm2, %v2457_v7  ;;  %v370_v10 = vld [vmem:[%s2553_s19 + $0x18] sm:$0xff]  ;;  %v2458_v12 = vmov 0.0   ;;  %vm589_vm3 = vcmask 11264  }
  0x1d   : > { %609 = vst.msk [vmem:[#allocation3 + $0x10] sm:$0xff] %vm606_vm2, %v2457_v7  ;;  %610 = vst.msk [vmem:[#allocation3 + $0x18] sm:$0xff] %vm606_vm2, %v2457_v7  ;;  %v387_v8 = vpack.c.bf16 %v2575_v6, %v2572_v5  ;;  %v377_v11 = vld [vmem:[%s2553_s19 + $0x50] sm:$0xff]  ;;  %v384_v13 = vpack.c.bf16 %v370_v10, %v369_v9  ;;  %v378_v14 = vld [vmem:[%s2553_s19 + $0x58] sm:$0xff] }
  0x1e   : > { %611 = vst.msk [vmem:[#allocation3 + $0x20] sm:$0xff] %vm606_vm2, %v2457_v7  ;;  %612 = vst.msk [vmem:[#allocation3 + $0x28] sm:$0xff] %vm606_vm2, %v2457_v7  ;;  %2121 = vmatprep.mubr.msk.bf16.mxu0 %vm399_vm1, %v383_v4  ;;  %v371_v15 = vld [vmem:[%s2553_s19 + $0x20] sm:$0xff]  ;;  %v372_v16 = vld [vmem:[%s2553_s19 + $0x28] sm:$0xff]  ;;  %v388_v17 = vpack.c.bf16 %v378_v14, %v377_v11 }
  0x1f   : > { %613 = vst.msk [vmem:[#allocation3 + $0x30] sm:$0xff] %vm606_vm2, %v2457_v7  ;;  %614 = vst.msk [vmem:[#allocation3 + $0x38] sm:$0xff] %vm606_vm2, %v2457_v7  ;;  %2129 = vmatprep.mubr.msk.bf16.mxu1 %vm399_vm1, %v387_v8  ;;  %v385_v18 = vpack.c.bf16 %v372_v16, %v371_v15  ;;  %v379_v19 = vld [vmem:[%s2553_s19 + $0x60] sm:$0xff]  ;;  %v380_v20 = vld [vmem:[%s2553_s19 + $0x68] sm:$0xff]  ;;  %2122 = vmatmul.mubr.msk.bf16.vlgmr.msra.gmra.mxu0 %vm399_vm1, %v384_v13 }
  0x20   : > { %615 = vst.msk [vmem:[#allocation3 + $0x40] sm:$0xff] %vm606_vm2, %v2457_v7  ;;  %616 = vst.msk [vmem:[#allocation3 + $0x48] sm:$0xff] %vm606_vm2, %v2457_v7  ;;  %v389_v21 = vpack.c.bf16 %v380_v20, %v379_v19  ;;  %2130 = vmatmul.mubr.msk.bf16.vlgmr.msra.gmra.mxu1 %vm399_vm1, %v388_v17  ;;  %v373_v22 = vld [vmem:[%s2553_s19 + $0x30] sm:$0xff]  ;;  %v374_v23 = vld [vmem:[%s2553_s19 + $0x38] sm:$0xff] }
  0x21   : > { %617 = vst.msk [vmem:[#allocation3 + $0x50] sm:$0xff] %vm606_vm2, %v2457_v7  ;;  %618 = vst.msk [vmem:[#allocation3 + $0x58] sm:$0xff] %vm606_vm2, %v2457_v7  ;;  %2125 = vmatprep.mubr.msk.bf16.mxu0 %vm399_vm1, %v385_v18  ;;  %v381_v24 = vld [vmem:[%s2553_s19 + $0x70] sm:$0xff]  ;;  %v382_v25 = vld [vmem:[%s2553_s19 + $0x78] sm:$0xff]  ;;  %v386_v26 = vpack.c.bf16 %v374_v23, %v373_v22 }
  0x22   : > { %619 = vst.msk [vmem:[#allocation3 + $0x60] sm:$0xff] %vm606_vm2, %v2457_v7  ;;  %620 = vst.msk [vmem:[#allocation3 + $0x68] sm:$0xff] %vm606_vm2, %v2457_v7  ;;  %2133 = vmatprep.mubr.msk.bf16.mxu1 %vm399_vm1, %v389_v21  ;;  %v390_v27 = vpack.c.bf16 %v382_v25, %v381_v24  ;;  %v2000_v28 = vld [vmem:[%s3205_s3] ss:$0 sm:$0xff] }
  0x23   : > { %621 = vst.msk [vmem:[#allocation3 + $0x70] sm:$0xff] %vm606_vm2, %v2457_v7  ;;  %622 = vst.msk [vmem:[#allocation3 + $0x78] sm:$0xff] %vm606_vm2, %v2457_v7 }
  0x24   : > { %623 = vst.msk [vmem:[#allocation4] sm:$0xff] %vm606_vm2, %v2458_v12  ;;  %624 = vst.msk [vmem:[#allocation4 + $0x8] sm:$0xff] %vm606_vm2, %v2458_v12 }
  0x25   : > { %625 = vst.msk [vmem:[#allocation4 + $0x10] sm:$0xff] %vm606_vm2, %v2458_v12  ;;  %626 = vst.msk [vmem:[#allocation4 + $0x18] sm:$0xff] %vm606_vm2, %v2458_v12 }
  0x26   : > { %627 = vst.msk [vmem:[#allocation4 + $0x20] sm:$0xff] %vm606_vm2, %v2458_v12  ;;  %628 = vst.msk [vmem:[#allocation4 + $0x28] sm:$0xff] %vm606_vm2, %v2458_v12 }
  0x27   : > { %629 = vst.msk [vmem:[#allocation4 + $0x30] sm:$0xff] %vm606_vm2, %v2458_v12  ;;  %630 = vst.msk [vmem:[#allocation4 + $0x38] sm:$0xff] %vm606_vm2, %v2458_v12  ;;  %2126 = vmatmul.mubr.msk.bf16.gmra.mxu0 %vm399_vm1, %v386_v26 }
  0x28   : > { %631 = vst.msk [vmem:[#allocation4 + $0x40] sm:$0xff] %vm606_vm2, %v2458_v12  ;;  %632 = vst.msk [vmem:[#allocation4 + $0x48] sm:$0xff] %vm606_vm2, %v2458_v12  ;;  %2134 = vmatmul.mubr.msk.bf16.gmra.mxu1 %vm399_vm1, %v390_v27 }
  0x29   : > { %633 = vst.msk [vmem:[#allocation4 + $0x50] sm:$0xff] %vm606_vm2, %v2458_v12  ;;  %634 = vst.msk [vmem:[#allocation4 + $0x58] sm:$0xff] %vm606_vm2, %v2458_v12 }
  0x2a   : > { %635 = vst.msk [vmem:[#allocation4 + $0x60] sm:$0xff] %vm606_vm2, %v2458_v12  ;;  %636 = vst.msk [vmem:[#allocation4 + $0x68] sm:$0xff] %vm606_vm2, %v2458_v12 }
  0x2b   : > { %637 = vst.msk [vmem:[#allocation4 + $0x70] sm:$0xff] %vm606_vm2, %v2458_v12  ;;  %638 = vst.msk [vmem:[#allocation4 + $0x78] sm:$0xff] %vm606_vm2, %v2458_v12 }
  0x2c   : > { %639 = vst.msk [vmem:[#allocation5] sm:$0xff] %vm399_vm1, %v2458_v12  ;;  %640 = vst.msk [vmem:[#allocation5 + $0x8] sm:$0xff] %vm399_vm1, %v2458_v12 }
  0x2d   : > { %641 = vst.msk [vmem:[#allocation5 + $0x10] sm:$0xff] %vm399_vm1, %v2458_v12  ;;  %642 = vst.msk [vmem:[#allocation5 + $0x18] sm:$0xff] %vm399_vm1, %v2458_v12 }
  0x2e   : > { %643 = vst.msk [vmem:[#allocation5 + $0x20] sm:$0xff] %vm399_vm1, %v2458_v12  ;;  %644 = vst.msk [vmem:[#allocation5 + $0x28] sm:$0xff] %vm399_vm1, %v2458_v12 }
  0x2f   : > { %645 = vst.msk [vmem:[#allocation5 + $0x30] sm:$0xff] %vm399_vm1, %v2458_v12  ;;  %646 = vst.msk [vmem:[#allocation5 + $0x38] sm:$0xff] %vm399_vm1, %v2458_v12 }
  0x30   : > { %647 = vst.msk [vmem:[#allocation5 + $0x40] sm:$0xff] %vm399_vm1, %v2458_v12  ;;  %648 = vst.msk [vmem:[#allocation5 + $0x48] sm:$0xff] %vm399_vm1, %v2458_v12 }
  0x31   : > { %649 = vst.msk [vmem:[#allocation5 + $0x50] sm:$0xff] %vm399_vm1, %v2458_v12  ;;  %650 = vst.msk [vmem:[#allocation5 + $0x58] sm:$0xff] %vm399_vm1, %v2458_v12 }
  0x32   : > { %651 = vst.msk [vmem:[#allocation5 + $0x60] sm:$0xff] %vm399_vm1, %v2458_v12  ;;  %652 = vst.msk [vmem:[#allocation5 + $0x68] sm:$0xff] %vm399_vm1, %v2458_v12 }
  0x33   : > { %653 = vst.msk [vmem:[#allocation5 + $0x70] sm:$0xff] %vm399_vm1, %v2458_v12  ;;  %654 = vst.msk [vmem:[#allocation5 + $0x78] sm:$0xff] %vm399_vm1, %v2458_v12 }
  0xdf   : > { %v2123_v29 = vpop.f32.mrf.mxu0 }
  0xe0   : > { %v471_v30 = vadd.f32 %v2123_v29, %v2000_v28  ;;  %v2131_v31 = vpop.f32.mrf.mxu1 }
  0xe1   : > { %v503_v32 = vadd.f32 %v2131_v31, %v2000_v28  ;;  %v462_v33 = vpop.f32.mrf.mxu0 }
  0xe2   : > { %v2055_v34 = vpack.c.bf16 %v471_v30, %v471_v30  ;;  %v463_v35 = vadd.f32 %v2000_v28, %v462_v33  ;;  %v494_v36 = vpop.f32.mrf.mxu1 }
  0xe3   : > { %v2063_v37 = vpack.c.bf16 %v503_v32, %v503_v32  ;;  %v495_v38 = vadd.f32 %v2000_v28, %v494_v36  ;;  %v2124_v39 = vpop.f32.mrf.mxu0 }
  0xe4   : > { %592 = vst.msk [vmem:[#allocation2 + $0x8] sm:$0xf] %vm589_vm3, %v2055_v34  ;;  %v2053_v40 = vpack.c.bf16 %v463_v35, %v463_v35  ;;  %v474_v41 = vadd.f32 %v2124_v39, %v2000_v28  ;;  %v2132_v42 = vpop.f32.mrf.mxu1 }
  0xe5   : > { %600 = vst.msk [vmem:[#allocation2 + $0x28] sm:$0xf] %vm589_vm3, %v2063_v37  ;;  %v2061_v43 = vpack.c.bf16 %v495_v38, %v495_v38  ;;  %v506_v44 = vadd.f32 %v2132_v42, %v2000_v28  ;;  %v465_v45 = vpop.f32.mrf.mxu0 }
  0xe6   : > { %590 = vst.msk [vmem:[#allocation2] sm:$0xf] %vm589_vm3, %v2053_v40  ;;  %v2056_v46 = vpack.c.bf16 %v474_v41, %v474_v41  ;;  %v466_v47 = vadd.f32 %v2000_v28, %v465_v45  ;;  %v497_v48 = vpop.f32.mrf.mxu1 }
  0xe7   : > { %598 = vst.msk [vmem:[#allocation2 + $0x20] sm:$0xf] %vm589_vm3, %v2061_v43  ;;  %v2064_v49 = vpack.c.bf16 %v506_v44, %v506_v44  ;;  %v498_v50 = vadd.f32 %v2000_v28, %v497_v48  ;;  %v2127_v51 = vpop.f32.mrf.mxu0 }
  0xe8   : > { %593 = vst.msk [vmem:[#allocation2 + $0xc] sm:$0xf] %vm589_vm3, %v2056_v46  ;;  %v2054_v52 = vpack.c.bf16 %v466_v47, %v466_v47  ;;  %v487_v53 = vadd.f32 %v2127_v51, %v2000_v28  ;;  %v2135_v54 = vpop.f32.mrf.mxu1 }
  0xe9   : > { %601 = vst.msk [vmem:[#allocation2 + $0x2c] sm:$0xf] %vm589_vm3, %v2064_v49  ;;  %v2062_v55 = vpack.c.bf16 %v498_v50, %v498_v50  ;;  %v519_v56 = vadd.f32 %v2135_v54, %v2000_v28  ;;  %v478_v57 = vpop.f32.mrf.mxu0 }
  0xea   : > { %591 = vst.msk [vmem:[#allocation2 + $0x4] sm:$0xf] %vm589_vm3, %v2054_v52  ;;  %v2059_v58 = vpack.c.bf16 %v487_v53, %v487_v53  ;;  %v479_v59 = vadd.f32 %v2000_v28, %v478_v57  ;;  %v510_v60 = vpop.f32.mrf.mxu1 }
  0xeb   : > { %599 = vst.msk [vmem:[#allocation2 + $0x24] sm:$0xf] %vm589_vm3, %v2062_v55  ;;  %v2067_v61 = vpack.c.bf16 %v519_v56, %v519_v56  ;;  %v511_v62 = vadd.f32 %v2000_v28, %v510_v60  ;;  %v2128_v63 = vpop.f32.mrf.mxu0 }
  0xec   : > { %596 = vst.msk [vmem:[#allocation2 + $0x18] sm:$0xf] %vm589_vm3, %v2059_v58  ;;  %v2057_v0 = vpack.c.bf16 %v479_v59, %v479_v59  ;;  %v490_v1 = vadd.f32 %v2128_v63, %v2000_v28  ;;  %v2136_v2 = vpop.f32.mrf.mxu1 }
  0xed   : > { %604 = vst.msk [vmem:[#allocation2 + $0x38] sm:$0xf] %vm589_vm3, %v2067_v61  ;;  %v2065_v3 = vpack.c.bf16 %v511_v62, %v511_v62  ;;  %v522_v4 = vadd.f32 %v2136_v2, %v2000_v28  ;;  %v481_v5 = vpop.f32.mrf.mxu0 }
  0xee   : > { %594 = vst.msk [vmem:[#allocation2 + $0x10] sm:$0xf] %vm589_vm3, %v2057_v0  ;;  %v2060_v6 = vpack.c.bf16 %v490_v1, %v490_v1  ;;  %v482_v7 = vadd.f32 %v2000_v28, %v481_v5  ;;  %v513_v8 = vpop.f32.mrf.mxu1 }
  0xef   : > { %602 = vst.msk [vmem:[#allocation2 + $0x30] sm:$0xf] %vm589_vm3, %v2065_v3  ;;  %v2068_v9 = vpack.c.bf16 %v522_v4, %v522_v4  ;;  %v514_v10 = vadd.f32 %v2000_v28, %v513_v8 }
  0xf0   : > { %597 = vst.msk [vmem:[#allocation2 + $0x1c] sm:$0xf] %vm589_vm3, %v2060_v6  ;;  %v2058_v11 = vpack.c.bf16 %v482_v7, %v482_v7 }
  0xf1   : > { %605 = vst.msk [vmem:[#allocation2 + $0x3c] sm:$0xf] %vm589_vm3, %v2068_v9  ;;  %v2066_v12 = vpack.c.bf16 %v514_v10, %v514_v10 }
  0xf2   : > { %595 = vst.msk [vmem:[#allocation2 + $0x14] sm:$0xf] %vm589_vm3, %v2058_v11 }
  0xf3   : > { %603 = vst.msk [vmem:[#allocation2 + $0x34] sm:$0xf] %vm589_vm3, %v2066_v12 }
  0xf4 PF: > { %v679_v13 = vld [vmem:[%s3206_s4] sm:$0xf]  ;;  %vm712_vm4 = vcmask 1043456   ;;  %v656_v15 = vld [vmem:[%s2563_s28 + $0x8] sm:$0xff]  ;;  %vm687_vm5 = vcmask 64512   ;;  %v657_v18 = vld [vmem:[%s2563_s28 + $0x10] sm:$0xff] }
  0xf5   : > { %v655_v14 = vld [vmem:[%s2563_s28] sm:$0xff]  ;;  %2223 = vmatprep.subr.msk.bf16.mxu0 %vm712_vm4, %v679_v13  ;;  %v714_v16 = vsel %vm712_vm4, %v679_v13, 0  ;;  %v658_v19 = vld [vmem:[%s2563_s28 + $0x18] sm:$0xff]  ;;  %v660_v22 = vld [vmem:[%s2563_s28 + $0x28] sm:$0xff]  ;;  %vm877_vm6 = vcmask 15360   ;;  %s2460_s21 = smov 126  }
  0xf6   : > { %v671_v17 = vpack.c.bf16 %v656_v15, %v655_v14  ;;  %v659_v20 = vld [vmem:[%s2563_s28 + $0x20] sm:$0xff]  ;;  %2138 = vmatpush3.bf16.msra.mxu0 %v714_v16  ;;  %v672_v21 = vpack.c.bf16 %v658_v19, %v657_v18  ;;  %v661_v24 = vld [vmem:[%s2563_s28 + $0x30] sm:$0xff]  ;;  %v662_v25 = vld [vmem:[%s2563_s28 + $0x38] sm:$0xff]  ;;  %vm1343_vm7 = vcmask 7168   ;;  %p2050_p10 = scmp.ne.s32.totalorder %s2431_s26, 1 }
  0xf7   : > { %v673_v23 = vpack.c.bf16 %v660_v22, %v659_v20  ;;  %v663_v26 = vld [vmem:[%s2563_s28 + $0x40] sm:$0xff]  ;;  %v664_v27 = vld [vmem:[%s2563_s28 + $0x48] sm:$0xff]  ;;  %v674_v28 = vpack.c.bf16 %v662_v25, %v661_v24  ;;  %v665_v30 = vld [vmem:[%s2563_s28 + $0x50] sm:$0xff]  ;;  %s1805_s26 = sld [smem:[#allocation6]] (!%p2050_p10) }
  0xf8   : > { %2139 = vmatprep.mubr.msk.bf16.mxu0 %vm687_vm5, %v671_v17  ;;  %v675_v29 = vpack.c.bf16 %v664_v27, %v663_v26  ;;  %v666_v31 = vld [vmem:[%s2563_s28 + $0x58] sm:$0xff]  ;;  %v667_v32 = vld [vmem:[%s2563_s28 + $0x60] sm:$0xff]  ;;  %v668_v33 = vld [vmem:[%s2563_s28 + $0x68] sm:$0xff] }
  0xf9   : > { %2140 = vmatmul.mubr.msk.bf16.vlgmr.msra.gmra.mxu0 %vm687_vm5, %v672_v21  ;;  %v676_v34 = vpack.c.bf16 %v666_v31, %v665_v30  ;;  %v677_v35 = vpack.c.bf16 %v668_v33, %v667_v32  ;;  %v669_v36 = vld [vmem:[%s2563_s28 + $0x70] sm:$0xff]  ;;  %v670_v37 = vld [vmem:[%s2563_s28 + $0x78] sm:$0xff]  ;;  %v2295_v39 = vld [vmem:[#allocation2] sm:$0xff]  }
  0xfa   : > { %2143 = vmatprep.mubr.msk.bf16.mxu0 %vm687_vm5, %v673_v23  ;;  %v678_v38 = vpack.c.bf16 %v670_v37, %v669_v36  ;;  %2171 = vmatprep.mubr.msk.bf16.mxu1 %vm877_vm6, %v2295_v39  ;;  %v2025_v41 = vld [vmem:[%s3207_s5] ss:$0 sm:$0xff]  ;;  %v2296_v25 = vld [vmem:[#allocation2 + $0x8] sm:$0xff]   ;;  %v2297_v26 = vld [vmem:[#allocation2 + $0x10] sm:$0xff]   ;;  %v2459_v39 = vmov 0  }
  0xfb   : > { %v2298_v27 = vld [vmem:[#allocation2 + $0x18] sm:$0xff]   ;;  %v2301_v30 = vld [vmem:[#allocation2 + $0x30] sm:$0xff]   ;;  %2293 = vset.pattern.permute.xlu0 %v2459_v39  ;;  %2294 = vset.pattern.permute.xlu1 %v2459_v39 }
  0xfc   : > { %v2302_v31 = vld [vmem:[#allocation2 + $0x38] sm:$0xff]  }
 0x101   : > { %2144 = vmatmul.mubr.msk.bf16.gmra.mxu0 %vm687_vm5, %v674_v28  ;;  %v2299_v28 = vld [vmem:[#allocation2 + $0x20] sm:$0xff]  }
 0x102   : > { %2147 = vmatprep.mubr.msk.bf16.mxu0 %vm687_vm5, %v675_v29  ;;  %v2300_v29 = vld [vmem:[#allocation2 + $0x28] sm:$0xff]  }
 0x109   : > { %2148 = vmatmul.mubr.msk.bf16.gmra.mxu0 %vm687_vm5, %v676_v34 }
 0x10a   : > { %2151 = vmatprep.mubr.msk.bf16.mxu0 %vm687_vm5, %v677_v35 }
 0x111   : > { %2152 = vmatmul.mubr.msk.bf16.gmra.mxu0 %vm687_vm5, %v678_v38 }
 0x1b9   : > { %v2141_v40 = vpop.f32.mrf.mxu0 }
 0x1ba   : > { %v759_v44 = vadd.f32 %v2141_v40, %v2025_v41 }
 0x1bb   : > { %v750_v42 = vpop.f32.mrf.mxu0 }
 0x1bc   : > { %v751_v47 = vadd.f32 %v2025_v41, %v750_v42 }
 0x1bd   : > { %v2142_v43 = vpop.f32.mrf.mxu0 }
 0x1be   : > { %v762_v45 = vadd.f32 %v2142_v43, %v2025_v41 }
 0x1bf   : > { %v753_v46 = vpop.f32.mrf.mxu0 }
 0x1c0   : > { %v2697_v48 = vpack.c.bf16 %v762_v45, %v759_v44  ;;  %v754_v49 = vadd.f32 %v2025_v41, %v753_v46 }
 0x1c1   : > { %v2145_v50 = vpop.f32.mrf.mxu0 }
 0x1c2   : > { %v2699_v51 = vpack.c.bf16 %v754_v49, %v751_v47  ;;  %v775_v15 = vadd.f32 %v2145_v50, %v2025_v41  ;;  %v906_v23 = vsel %vm877_vm6, %v2697_v48, 0  ;;  %v2807_v50 = vld [vmem:[#allocation3 + $0x10] sm:$0xff] }
 0x1c3   : > { %v766_v52 = vpop.f32.mrf.mxu0 }
 0x1c4   : > { %v767_v19 = vadd.f32 %v2025_v41, %v766_v52  ;;  %v903_v24 = vsel %vm877_vm6, %v2699_v51, 0 }
 0x1c5   : > { %v2146_v53 = vpop.f32.mrf.mxu0 }
 0x1c6   : > { %v778_v14 = vadd.f32 %v2146_v53, %v2025_v41  ;;  %v2809_v53 = vld [vmem:[#allocation3] sm:$0xff] }
 0x1c7   : > { %v769_v54 = vpop.f32.mrf.mxu0 }
 0x1c8   : > { %v2723_v16 = vpack.c.bf16 %v778_v14, %v775_v15  ;;  %v770_v18 = vadd.f32 %v2025_v41, %v769_v54  ;;  %v2869_v15 = vld [vmem:[#allocation3 + $0x58] sm:$0xff] }
 0x1c9   : > { %v2149_v55 = vpop.f32.mrf.mxu0 }
 0x1ca   : > { %v791_v7 = vadd.f32 %v2149_v55, %v2025_v41  ;;  %v815_v20 = vpack.c.bf16 %v770_v18, %v767_v19  ;;  %v912_v21 = vsel %vm877_vm6, %v2723_v16, 0  ;;  %v1033_v19 = vld [vmem:[#allocation3 + $0x50] sm:$0xff] }
 0x1cb   : > { %v782_v56 = vpop.f32.mrf.mxu0 }
 0x1cc   : > { %v783_v11 = vadd.f32 %v2025_v41, %v782_v56  ;;  %v909_v22 = vsel %vm877_vm6, %v815_v20, 0  ;;  %v2814_v56 = vld [vmem:[#allocation3 + $0x18] sm:$0xff] }
 0x1cd   : > { %v2150_v57 = vpop.f32.mrf.mxu0 }
 0x1ce   : > { %v794_v6 = vadd.f32 %v2150_v57, %v2025_v41 }
 0x1cf   : > { %v785_v58 = vpop.f32.mrf.mxu0 }
 0x1d0   : > { %v2711_v8 = vpack.c.bf16 %v794_v6, %v791_v7  ;;  %v786_v10 = vadd.f32 %v2025_v41, %v785_v58 }
 0x1d1   : > { %v2153_v59 = vpop.f32.mrf.mxu0 }
 0x1d2   : > { %v807_v62 = vadd.f32 %v2153_v59, %v2025_v41  ;;  %v2717_v12 = vpack.c.bf16 %v786_v10, %v783_v11  ;;  %v918_v13 = vsel %vm877_vm6, %v2711_v8, 0  ;;  %v2820_v59 = vld [vmem:[#allocation3 + $0x8] sm:$0xff] }
 0x1d3   : > { %v798_v60 = vpop.f32.mrf.mxu0 }
 0x1d4   : > { %v799_v1 = vadd.f32 %v2025_v41, %v798_v60  ;;  %v915_v17 = vsel %vm877_vm6, %v2717_v12, 0 }
 0x1d5   : > { %v2154_v61 = vpop.f32.mrf.mxu0 }
 0x1d6   : > { %v810_v63 = vadd.f32 %v2154_v61, %v2025_v41 }
 0x1d7   : > { %v801_v0 = vpop.f32.mrf.mxu0 }
 0x1d8   : > { %v2701_v2 = vpack.c.bf16 %v810_v63, %v807_v62  ;;  %v802_v3 = vadd.f32 %v2025_v41, %v801_v0  ;;  %v2831_v63 = vld [vmem:[#allocation3 + $0x20] sm:$0xff] }
 0x1da   : > { %v2703_v4 = vpack.c.bf16 %v802_v3, %v799_v1  ;;  %2224 = vmatprep.subr.msk.bf16.mxu1 %vm877_vm6, %v2701_v2  ;;  %v924_v5 = vsel %vm877_vm6, %v2701_v2, 0 }
 0x1db   : > { %2156 = vmatpush3.bf16.xpose.msra.mxu1 %v924_v5  ;;  %v2843_v5 = vld [vmem:[#allocation3 + $0x30] sm:$0xff] }
 0x1dc   : > { %2225 = vmatprep.subr.msk.bf16.mxu1 %vm877_vm6, %v2703_v4  ;;  %v921_v9 = vsel %vm877_vm6, %v2703_v4, 0 }
 0x1e3   : > { %2158 = vmatpush3.bf16.xpose.msra.mxu1 %v921_v9 }
 0x1e4   : > { %2226 = vmatprep.subr.msk.bf16.mxu1 %vm877_vm6, %v2711_v8 }
 0x1eb   : > { %2160 = vmatpush3.bf16.xpose.msra.mxu1 %v918_v13 }
 0x1ec   : > { %2227 = vmatprep.subr.msk.bf16.mxu1 %vm877_vm6, %v2717_v12 }
 0x1f3   : > { %2162 = vmatpush3.bf16.xpose.msra.mxu1 %v915_v17 }
 0x1f4   : > { %2228 = vmatprep.subr.msk.bf16.mxu1 %vm877_vm6, %v2723_v16 }
 0x1fb   : > { %2164 = vmatpush3.bf16.xpose.msra.mxu1 %v912_v21 }
 0x1fc   : > { %2229 = vmatprep.subr.msk.bf16.mxu1 %vm877_vm6, %v815_v20 }
 0x203   : > { %2166 = vmatpush3.bf16.xpose.msra.mxu1 %v909_v22  ;;  %v2885_v22 = vld [vmem:[#allocation3 + $0x48] sm:$0xff] }
 0x204   : > { %2230 = vmatprep.subr.msk.bf16.mxu1 %vm877_vm6, %v2697_v48 }
 0x20b   : > { %2168 = vmatpush3.bf16.xpose.msra.mxu1 %v906_v23 }
 0x20c   : > { %2231 = vmatprep.subr.msk.bf16.mxu1 %vm877_vm6, %v2699_v51 }
 0x213   : > { %2170 = vmatpush3.bf16.xpose.msra.mxu1 %v903_v24 }
 0x21a   : > { %2172 = vmatmul.mubr.msk.bf16.vlgmr.msra.gmra.mxu1 %vm877_vm6, %v2296_v25 }
 0x21b   : > { %2175 = vmatprep.mubr.msk.bf16.mxu1 %vm877_vm6, %v2297_v26 }
 0x222   : > { %2176 = vmatmul.mubr.msk.bf16.gmra.mxu1 %vm877_vm6, %v2298_v27  ;;  %v1035_v27 = vld [vmem:[#allocation3 + $0x60] sm:$0xff] }
 0x223   : > { %2179 = vmatprep.mubr.msk.bf16.mxu1 %vm877_vm6, %v2299_v28 }
 0x22a   : > { %2180 = vmatmul.mubr.msk.bf16.gmra.mxu1 %vm877_vm6, %v2300_v29 }
 0x22b   : > { %2183 = vmatprep.mubr.msk.bf16.mxu1 %vm877_vm6, %v2301_v30 }
 0x232   : > { %2184 = vmatmul.mubr.msk.bf16.gmra.mxu1 %vm877_vm6, %v2302_v31 }
 0x2da   : > { %v2748_v32 = vpop.f32.mrf.mxu1 }
 0x2db   : > { %1043 = vmax.xlane.f32.xlu1 %v2748_v32 }
 0x2dc   : > { %v2751_v33 = vpop.f32.mrf.mxu1 }
 0x2dd   : > { %1039 = vmax.xlane.f32.xlu0 %v2751_v33 }
 0x2de   : > { %v2754_v34 = vpop.f32.mrf.mxu1 }
 0x2df   : > { %1045 = vmax.xlane.f32.xlu1 %v2754_v34 }
 0x2e0   : > { %v2757_v35 = vpop.f32.mrf.mxu1 }
 0x2e1   : > { %1041 = vmax.xlane.f32.xlu0 %v2757_v35 }
 0x2e2   : > { %v2760_v36 = vpop.f32.mrf.mxu1 }
 0x2e4   : > { %v2762_v37 = vpop.f32.mrf.mxu1 }
 0x2e5   : > { %1047 = vmax.xlane.f32.xlu0 %v2762_v37 }
 0x2e6   : > { %v2765_v38 = vpop.f32.mrf.mxu1 }
 0x2e7   : > { %1053 = vmax.xlane.f32.xlu1 %v2765_v38 }
 0x2e8   : > { %v2768_v40 = vpop.f32.mrf.mxu1 }
 0x2e9   : > { %1051 = vmax.xlane.f32.xlu0 %v2760_v36 }
 0x2ea   : > { %v2771_v41 = vpop.f32.mrf.mxu1 }
 0x2eb   : > { %1049 = vmax.xlane.f32.xlu1 %v2768_v40 }
 0x2ec   : > { %v2774_v42 = vpop.f32.mrf.mxu1 }
 0x2ed   : > { %1055 = vmax.xlane.f32.xlu0 %v2774_v42 }
 0x2ee   : > { %v2777_v43 = vpop.f32.mrf.mxu1 }
 0x2ef   : > { %1061 = vmax.xlane.f32.xlu1 %v2777_v43 }
 0x2f0   : > { %v2780_v44 = vpop.f32.mrf.mxu1 }
 0x2f1   : > { %1059 = vmax.xlane.f32.xlu0 %v2771_v41 }
 0x2f2   : > { %v2783_v45 = vpop.f32.mrf.mxu1 }
 0x2f3   : > { %1057 = vmax.xlane.f32.xlu1 %v2780_v44 }
 0x2f4   : > { %v2786_v46 = vpop.f32.mrf.mxu1 }
 0x2f5   : > { %1063 = vmax.xlane.f32.xlu0 %v2786_v46 }
 0x2f6   : > { %v2799_v47 = vpop.f32.mrf.mxu1 }
 0x2f8   : > { %v2802_v49 = vpop.f32.mrf.mxu1 }
 0x2f9   : > { %1067 = vmax.xlane.f32.xlu0 %v2783_v45 }
 0x304   : > { %1500 = vrot.lane.b32.xlu1 %v2703_v4, %s2460_s21 }
 0x308   : > { %1498 = vrot.lane.b32.xlu1 %v2711_v8, %s2460_s21  ;;  %v2851_v8 = vld [vmem:[#allocation3 + $0x28] sm:$0xff] }
 0x30f   : > { %1502 = vrot.lane.b32.xlu0 %v2701_v2, %s2460_s21  ;;  %v2838_v2 = vld [vmem:[#allocation3 + $0x38] sm:$0xff] }
 0x313   : > { %1496 = vrot.lane.b32.xlu0 %v2717_v12, %s2460_s21  ;;  %v2861_v12 = vld [vmem:[#allocation3 + $0x40] sm:$0xff] }
 0x317   : > { %1492 = vrot.lane.b32.xlu0 %v815_v20, %s2460_s21 }
 0x32c   : > { %1069 = vmax.xlane.f32.xlu1 %v2799_v47 }
 0x330   : > { %1065 = vmax.xlane.f32.xlu1 %v2802_v49 }
 0x341   : > { %1494 = vrot.lane.b32.xlu1 %v2723_v16, %s2460_s21 }
 0x364   : > { %v1044_v52 = vpop.xlane.xlu1 %1043 }
 0x365   : > { %v2812_v54 = vmax.f32 %v2807_v50, %v1044_v52 }
 0x366   : > { %v1040_v55 = vpop.xlane.xlu0 %1039 }
 0x367   : > { %1643 = vst.msk [vmem:[#allocation3 + $0x10] sm:$0xff] %vm1343_vm7, %v2812_v54  ;;  %v1071_v57 = vmax.f32 %v2809_v53, %v1040_v55  ;;  %1147 = vperm.xlu0 %2293, %v2812_v54   ;;  %v1089_v30 = vsub.f32 %v2807_v50, %v2812_v54 }
 0x368   : > { %v1046_v58 = vpop.xlane.xlu1 %1045 }
 0x369   : > { %1641 = vst.msk [vmem:[#allocation3] sm:$0xff] %vm1343_vm7, %v1071_v57  ;;  %v2824_v60 = vmax.f32 %v2814_v56, %v1046_v58  ;;  %1137 = vperm.xlu1 %2294, %v1071_v57   ;;  %v1087_v23 = vsub.f32 %v2809_v53, %v1071_v57  ;;  %v2904_v53 = vld [vmem:[#allocation3 + $0x70] sm:$0xff]  ;;  %v1107_v57 = vmul.f32 1.442695, %v1089_v30  ;;  %v2955_v30 = vld [vmem:[#allocation3 + $0x78] sm:$0xff] }
 0x36a   : > { %v1042_v61 = vpop.xlane.xlu0 %1041 }
 0x36b   : > { %1644 = vst.msk [vmem:[#allocation3 + $0x18] sm:$0xff] %vm1343_vm7, %v2824_v60  ;;  %v2829_v62 = vmax.f32 %v2820_v59, %v1042_v61  ;;  %v1103_v31 = vmul.f32 1.442695, %v1087_v23  ;;  %v1090_v50 = vsub.f32 %v2814_v56, %v2824_v60 }
 0x36d   : > { %v1088_v0 = vsub.f32 %v2820_v59, %v2829_v62  ;;  %1642 = vst.msk [vmem:[#allocation3 + $0x8] sm:$0xff] %vm1343_vm7, %v2829_v62  ;;  %1152 = vperm.xlu1 %2294, %v2824_v60   ;;  %2303 = vpow2.f32 %v1103_v31 }
 0x36e   : > { %v1048_v1 = vpop.xlane.xlu0 %1047  ;;  %2305 = vpow2.f32 %v1107_v57  ;;  %v1036_v57 = vld [vmem:[#allocation3 + $0x68] sm:$0xff] }
 0x36f   : > { %v2841_v3 = vmax.f32 %v2831_v63, %v1048_v1 }
 0x370   : > { %v1054_v4 = vpop.xlane.xlu1 %1053 }
 0x371   : > { %1645 = vst.msk [vmem:[#allocation3 + $0x20] sm:$0xff] %vm1343_vm7, %v2841_v3  ;;  %v2848_v6 = vmax.f32 %v2838_v2, %v1054_v4  ;;  %1142 = vperm.xlu1 %2294, %v2829_v62   ;;  %v1109_v4 = vmul.f32 1.442695, %v1090_v50  ;;  %v1091_v56 = vsub.f32 %v2831_v63, %v2841_v3 }
 0x372   : > { %v1052_v7 = vpop.xlane.xlu0 %1051 }
 0x373   : > { %v1094_v9 = vsub.f32 %v2838_v2, %v2848_v6  ;;  %1648 = vst.msk [vmem:[#allocation3 + $0x38] sm:$0xff] %vm1343_vm7, %v2848_v6  ;;  %v2858_v10 = vmax.f32 %v2843_v5, %v1052_v7  ;;  %1172 = vperm.xlu0 %2293, %v2848_v6   ;;  %2307 = vpow2.f32 %v1109_v4 }
 0x374   : > { %v1050_v11 = vpop.xlane.xlu1 %1049 }
 0x375   : > { %1647 = vst.msk [vmem:[#allocation3 + $0x30] sm:$0xff] %vm1343_vm7, %v2858_v10  ;;  %v2866_v13 = vmax.f32 %v2851_v8, %v1050_v11  ;;  %1167 = vperm.xlu1 %2294, %v2858_v10   ;;  %v1093_v60 = vsub.f32 %v2843_v5, %v2858_v10 }
 0x376   : > { %v1056_v14 = vpop.xlane.xlu0 %1055 }
 0x377   : > { %v1092_v16 = vsub.f32 %v2851_v8, %v2866_v13  ;;  %1646 = vst.msk [vmem:[#allocation3 + $0x28] sm:$0xff] %vm1343_vm7, %v2866_v13  ;;  %v2876_v17 = vmax.f32 %v2861_v12, %v1056_v14  ;;  %1162 = vperm.xlu0 %2293, %v2866_v13  }
 0x378   : > { %v1062_v18 = vpop.xlane.xlu1 %1061 }
 0x379   : > { %1649 = vst.msk [vmem:[#allocation3 + $0x40] sm:$0xff] %vm1343_vm7, %v2876_v17  ;;  %v2882_v20 = vmax.f32 %v2869_v15, %v1062_v18  ;;  %1157 = vperm.xlu1 %2294, %v2841_v3   ;;  %v1095_v3 = vsub.f32 %v2861_v12, %v2876_v17  ;;  %v1113_v62 = vmul.f32 1.442695, %v1092_v16 }
 0x37a   : > { %v1060_v21 = vpop.xlane.xlu0 %1059  ;;  %v2926_v14 = vpop.eup %2303 }
 0x37b   : > { %v1098_v24 = vsub.f32 %v2869_v15, %v2882_v20  ;;  %1652 = vst.msk [vmem:[#allocation3 + $0x58] sm:$0xff] %vm1343_vm7, %v2882_v20  ;;  %v1081_v25 = vmax.f32 %v1033_v19, %v1060_v21  ;;  %1192 = vperm.xlu0 %2293, %v2882_v20   ;;  %v2931_v10 = vpop.eup %2305  ;;  %v1119_v21 = vmul.f32 1.442695, %v1095_v3 }
 0x37c   : > { %v1058_v26 = vpop.xlane.xlu1 %1057 }
 0x37d   : > { %1651 = vst.msk [vmem:[#allocation3 + $0x50] sm:$0xff] %vm1343_vm7, %v1081_v25  ;;  %v2895_v28 = vmax.f32 %v2885_v22, %v1058_v26  ;;  %1187 = vperm.xlu1 %2294, %v1081_v25   ;;  %v1097_v11 = vsub.f32 %v1033_v19, %v1081_v25  ;;  %v1125_v6 = vmul.f32 1.442695, %v1098_v24 }
 0x37e   : > { %v1064_v29 = vpop.xlane.xlu0 %1063 }
 0x37f   : > { %v1096_v39 = vsub.f32 %v2885_v22, %v2895_v28  ;;  %1650 = vst.msk [vmem:[#allocation3 + $0x48] sm:$0xff] %vm1343_vm7, %v2895_v28  ;;  %v1083_v52 = vmax.f32 %v1035_v27, %v1064_v29  ;;  %1182 = vperm.xlu0 %2293, %v2895_v28   ;;  %v1123_v5 = vmul.f32 1.442695, %v1097_v11  ;;  %v1105_v29 = vmul.f32 1.442695, %v1088_v0 }
 0x380   : > { %v1501_v61 = vpop.permute.xlu1 %1500  ;;  %v2934_v19 = vpop.eup %2307 }
 0x381   : > { %1653 = vst.msk [vmem:[#allocation3 + $0x60] sm:$0xff] %vm1343_vm7, %v1083_v52  ;;  %1177 = vperm.xlu1 %2294, %v2876_v17   ;;  %v1099_v18 = vsub.f32 %v1035_v27, %v1083_v52  ;;  %v1121_v8 = vmul.f32 1.442695, %v1096_v39 }
 0x382   : > { %v1068_v55 = vpop.xlane.xlu0 %1067 }
 0x383   : > { %v2911_v54 = vmax.f32 %v2904_v53, %v1068_v55  ;;  %1488 = vrot.lane.b32.xlu0 %v2699_v51, %s2460_s21  ;;  %v1111_v51 = vmul.f32 1.442695, %v1091_v56  ;;  %v1127_v23 = vmul.f32 1.442695, %v1099_v18 }
 0x384   : > { %v1499_v7 = vpop.permute.xlu1 %1498 }
 0x385   : > { %v1101_v58 = vsub.f32 %v2904_v53, %v2911_v54  ;;  %1655 = vst.msk [vmem:[#allocation3 + $0x70] sm:$0xff] %vm1343_vm7, %v2911_v54  ;;  %1490 = vrot.lane.b32.xlu1 %v2697_v48, %s2460_s21  ;;  %2309 = vpow2.f32 %v1111_v51  ;;  %v1115_v48 = vmul.f32 1.442695, %v1093_v60 }
 0x386   : > { %v1503_v1 = vpop.permute.xlu0 %1502 }
 0x387   : > { %2187 = vmatprep.subr.bf16.mxu0 %v1503_v1  ;;  %2311 = vpow2.f32 %v1115_v48 }
 0x388   : > { %2188 = vmatpush3.bf16.msra.mxu0 %v1503_v1  ;;  %2313 = vpow2.f32 %v1123_v5 }
 0x389   : > { %2189 = vmatprep.subr.bf16.mxu0 %v1501_v61  ;;  %1197 = vperm.xlu1 %2294, %v1083_v52   ;;  %2315 = vpow2.f32 %v1119_v21  ;;  %v1117_v52 = vmul.f32 1.442695, %v1094_v9 }
 0x38a   : > { %v1497_v63 = vpop.permute.xlu0 %1496  ;;  %2317 = vpow2.f32 %v1127_v23 }
 0x38b   : > { %2319 = vpow2.f32 %v1105_v29 }
 0x38c   : > { %2190 = vmatpush3.bf16.msra.mxu0 %v1501_v61  ;;  %2321 = vpow2.f32 %v1117_v52 }
 0x38d   : > { %2191 = vmatprep.subr.bf16.mxu0 %v1499_v7  ;;  %1207 = vperm.xlu1 %2294, %v2911_v54   ;;  %2323 = vpow2.f32 %v1113_v62 }
 0x38e   : > { %v1493_v9 = vpop.permute.xlu0 %1492  ;;  %2325 = vpow2.f32 %v1125_v6 }
 0x38f   : > { %2327 = vpow2.f32 %v1121_v8 }
 0x390   : > { %2192 = vmatpush3.bf16.msra.mxu0 %v1499_v7 }
 0x391   : > { %2193 = vmatprep.subr.bf16.mxu0 %v1497_v63  ;;  %1378 = vperm.xlu1 %2294, %v2926_v14  }
 0x392   : > { %v2937_v25 = vpop.eup %2309 }
 0x394   : > { %2194 = vmatpush3.bf16.msra.mxu0 %v1497_v63  ;;  %v2940_v12 = vpop.eup %2311 }
 0x395   : > { %1388 = vperm.xlu1 %2294, %v2931_v10   ;;  %v2943_v17 = vpop.eup %2313 }
 0x396   : > { %v2946_v26 = vpop.eup %2315 }
 0x397   : > { %v2949_v27 = vpop.eup %2317 }
 0x398   : > { %v2978_v16 = vpop.eup %2319 }
 0x399   : > { %1393 = vperm.xlu1 %2294, %v2934_v19   ;;  %v2981_v20 = vpop.eup %2321 }
 0x39a   : > { %v2984_v24 = vpop.eup %2323 }
 0x39b   : > { %v2987_v61 = vpop.eup %2325 }
 0x39c   : > { %v2990_v22 = vpop.eup %2327 }
 0x39d   : > { %1398 = vperm.xlu1 %2294, %v2937_v25  }
 0x3a1   : > { %1408 = vperm.xlu1 %2294, %v2940_v12  }
 0x3a5   : > { %1428 = vperm.xlu1 %2294, %v2943_v17  }
 0x3a9   : > { %1418 = vperm.xlu1 %2294, %v2946_v26  }
 0x3ad   : > { %1438 = vperm.xlu1 %2294, %v2949_v27  }
 0x3b5   : > { %v1070_v31 = vpop.xlane.xlu1 %1069 }
 0x3b6   : > { %v2961_v55 = vmax.f32 %v2955_v30, %v1070_v31 }
 0x3b8   : > { %v1102_v50 = vsub.f32 %v2955_v30, %v2961_v55  ;;  %1656 = vst.msk [vmem:[#allocation3 + $0x78] sm:$0xff] %vm1343_vm7, %v2961_v55 }
 0x3b9   : > { %v1066_v59 = vpop.xlane.xlu1 %1065 }
 0x3ba   : > { %v1084_v0 = vmax.f32 %v1036_v57, %v1066_v59 }
 0x3bc   : > { %1654 = vst.msk [vmem:[#allocation3 + $0x68] sm:$0xff] %vm1343_vm7, %v1084_v0  ;;  %1202 = vperm.xlu0 %2293, %v1084_v0   ;;  %v1100_v13 = vsub.f32 %v1036_v57, %v1084_v0 }
 0x3bd   : > { %v1495_v2 = vpop.permute.xlu1 %1494 }
 0x3be   : > { %2195 = vmatprep.subr.bf16.mxu0 %v1495_v2  ;;  %v1129_v15 = vmul.f32 1.442695, %v1100_v13 }
 0x3bf   : > { %2196 = vmatpush3.bf16.msra.mxu0 %v1495_v2 }
 0x3c0   : > { %1212 = vperm.xlu0 %2293, %v2961_v55   ;;  %2197 = vmatprep.subr.bf16.mxu0 %v1493_v9  ;;  %2329 = vpow2.f32 %v1129_v15 }
 0x3c3   : > { %2198 = vmatpush3.bf16.msra.mxu0 %v1493_v9 }
 0x3c4   : > { %1383 = vperm.xlu0 %2293, %v2978_v16  }
 0x3c8   : > { %1413 = vperm.xlu0 %2293, %v2981_v20  }
 0x3cc   : > { %1403 = vperm.xlu0 %2293, %v2984_v24  }
 0x3cd   : > { %v2993_v28 = vpop.eup %2329 }
 0x3d0   : > { %1433 = vperm.xlu0 %2293, %v2987_v61  }
 0x3d4   : > { %1423 = vperm.xlu0 %2293, %v2990_v22  }
 0x3d8   : > { %1443 = vperm.xlu0 %2293, %v2993_v28  }
 0x3e2   : > { %v1148_v39 = vpop.permute.xlu0 %1147 }
 0x3e3   : > { %v1217_v1 = vsub.f32 %v2748_v32, %v1148_v39 }
 0x3e4   : > { %v1138_v4 = vpop.permute.xlu1 %1137 }
 0x3e5   : > { %v1235_v56 = vmul.f32 1.442695, %v1217_v1  ;;  %v1215_v51 = vsub.f32 %v2751_v33, %v1138_v4 }
 0x3e7   : > { %v1231_v60 = vmul.f32 1.442695, %v1215_v51  ;;  %2331 = vpow2.f32 %v1235_v56 }
 0x3e8   : > { %v1153_v7 = vpop.permute.xlu1 %1152 }
 0x3e9   : > { %2333 = vpow2.f32 %v1231_v60  ;;  %v1218_v48 = vsub.f32 %v2754_v34, %v1153_v7 }
 0x3eb   : > { %v1237_v11 = vmul.f32 1.442695, %v1218_v48 }
 0x3ec   : > { %v1143_v63 = vpop.permute.xlu1 %1142 }
 0x3ed   : > { %2335 = vpow2.f32 %v1237_v11  ;;  %v1216_v3 = vsub.f32 %v2757_v35, %v1143_v63 }
 0x3ee   : > { %v1173_v5 = vpop.permute.xlu0 %1172 }
 0x3ef   : > { %v1233_v18 = vmul.f32 1.442695, %v1216_v3  ;;  %v1222_v21 = vsub.f32 %v2765_v38, %v1173_v5 }
 0x3f0   : > { %v1168_v32 = vpop.permute.xlu1 %1167 }
 0x3f1   : > { %2337 = vpow2.f32 %v1233_v18  ;;  %v1245_v23 = vmul.f32 1.442695, %v1222_v21  ;;  %v1221_v33 = vsub.f32 %v2760_v36, %v1168_v32 }
 0x3f2   : > { %v1163_v29 = vpop.permute.xlu0 %1162 }
 0x3f3   : > { %v1243_v31 = vmul.f32 1.442695, %v1221_v33  ;;  %v1220_v52 = vsub.f32 %v2768_v40, %v1163_v29  ;;  %2339 = vpow2.f32 %v1245_v23 }
 0x3f4   : > { %v1158_v34 = vpop.permute.xlu1 %1157  ;;  %v2332_v57 = vpop.eup %2331 }
 0x3f5   : > { %2341 = vpow2.f32 %v1243_v31  ;;  %v1241_v59 = vmul.f32 1.442695, %v1220_v52  ;;  %v1219_v35 = vsub.f32 %v2762_v37, %v1158_v34 }
 0x3f6   : > { %v2334_v62 = vpop.eup %2333  ;;  %v1193_v0 = vpop.permute.xlu0 %1192 }
 0x3f7   : > { %v1239_v2 = vmul.f32 1.442695, %v1219_v35  ;;  %v1226_v38 = vsub.f32 %v2777_v43, %v1193_v0  ;;  %1299 = vadd.xlane.f32.xlu0 %v2332_v57  ;;  %1295 = vadd.xlane.f32.xlu1 %v2334_v62  ;;  %2343 = vpow2.f32 %v1241_v59  ;;  %v1131_v59 = vmul.f32 1.442695, %v1101_v58 }
 0x3f8   : > { %v1188_v36 = vpop.permute.xlu1 %1187 }
 0x3f9   : > { %2345 = vpow2.f32 %v1239_v2  ;;  %v1253_v6 = vmul.f32 1.442695, %v1226_v38  ;;  %v1225_v40 = vsub.f32 %v2771_v41, %v1188_v36 }
 0x3fa   : > { %v2336_v9 = vpop.eup %2335  ;;  %v1183_v8 = vpop.permute.xlu0 %1182 }
 0x3fb   : > { %v1251_v13 = vmul.f32 1.442695, %v1225_v40  ;;  %v1224_v15 = vsub.f32 %v2780_v44, %v1183_v8  ;;  %1301 = vadd.xlane.f32.xlu0 %v2336_v9  ;;  %2347 = vpow2.f32 %v1253_v6 }
 0x3fc   : > { %v1178_v37 = vpop.permute.xlu1 %1177 }
 0x3fd   : > { %2349 = vpow2.f32 %v1251_v13  ;;  %v1249_v39 = vmul.f32 1.442695, %v1224_v15  ;;  %v1223_v43 = vsub.f32 %v2774_v42, %v1178_v37  ;;  %v1473_v42 = vpack.c.bf16 %v2336_v9, %v2332_v57 }
 0x3fe   : > { %v2338_v1 = vpop.eup %2337  ;;  %v1489_v44 = vpop.permute.xlu0 %1488 }
 0x3ff   : > { %v1247_v4 = vmul.f32 1.442695, %v1223_v43  ;;  %1297 = vadd.xlane.f32.xlu0 %v2338_v1  ;;  %v1472_v56 = vpack.c.bf16 %v2338_v1, %v2334_v62  ;;  %2351 = vpow2.f32 %v1249_v39 }
 0x400   : > { %v1491_v51 = vpop.permute.xlu1 %1490  ;;  %v2340_v60 = vpop.eup %2339 }
 0x401   : > { %2353 = vpow2.f32 %v1247_v4  ;;  %2199 = vmatprep.subr.bf16.mxu0 %v1491_v51  ;;  %2203 = vmatprep.mubr.bf16.mxu0 %v1472_v56 }
 0x402   : > { %v2342_v41 = vpop.eup %2341  ;;  %2200 = vmatpush3.bf16.msra.mxu0 %v1491_v51 }
 0x403   : > { %1309 = vadd.xlane.f32.xlu0 %v2340_v60  ;;  %1307 = vadd.xlane.f32.xlu1 %v2342_v41  ;;  %v1475_v52 = vpack.c.bf16 %v2340_v60, %v2342_v41  ;;  %v1265_v60 = vld [vmem:[#allocation4 + $0x10] sm:$0xff]  ;;  %v1263_v41 = vld [vmem:[#allocation4] sm:$0xff] }
 0x404   : > { %2201 = vmatprep.subr.bf16.mxu0 %v1489_v44  ;;  %v1198_v7 = vpop.permute.xlu1 %1197  ;;  %v2344_v48 = vpop.eup %2343 }
 0x405   : > { %v1227_v18 = vsub.f32 %v2786_v46, %v1198_v7  ;;  %v1279_v7 = vmul.f32 %v2926_v14, %v1263_v41  ;;  %v1270_v14 = vld [vmem:[#allocation4 + $0x38] sm:$0xff] }
 0x406   : > { %v2346_v11 = vpop.eup %2345  ;;  %2202 = vmatpush3.bf16.msra.mxu0 %v1489_v44  ;;  %v1281_v44 = vmul.f32 %v2931_v10, %v1265_v60 }
 0x407   : > { %1305 = vadd.xlane.f32.xlu0 %v2344_v48  ;;  %1303 = vadd.xlane.f32.xlu1 %v2346_v11  ;;  %v1474_v63 = vpack.c.bf16 %v2344_v48, %v2346_v11  ;;  %v1255_v29 = vmul.f32 1.442695, %v1227_v18 }
 0x408   : > { %v1208_v3 = vpop.permute.xlu1 %1207  ;;  %v2348_v5 = vpop.eup %2347 }
 0x409   : > { %v1229_v21 = vsub.f32 %v2783_v45, %v1208_v3  ;;  %2204 = vmatmul.mubr.bf16.vlgmr.msra.gmra.mxu0 %v1473_v42  ;;  %v1266_v42 = vld [vmem:[#allocation4 + $0x18] sm:$0xff] }
 0x40a   : > { %v2350_v32 = vpop.eup %2349  ;;  %2207 = vmatprep.mubr.bf16.mxu0 %v1474_v63 }
 0x40b   : > { %v1259_v23 = vmul.f32 1.442695, %v1229_v21  ;;  %1317 = vadd.xlane.f32.xlu0 %v2348_v5  ;;  %1315 = vadd.xlane.f32.xlu1 %v2350_v32  ;;  %v1477_v46 = vpack.c.bf16 %v2348_v5, %v2350_v32  ;;  %v1282_v5 = vmul.f32 %v2934_v19, %v1266_v42  ;;  %v1264_v21 = vld [vmem:[#allocation4 + $0x8] sm:$0xff] }
 0x40c   : > { %v2352_v33 = vpop.eup %2351  ;;  %v3018_v58 = vpop.permute.xlu1 %1378  ;;  %v1280_v10 = vmul.f32 %v2978_v16, %v1264_v21  ;;  %v1268_v19 = vld [vmem:[#allocation4 + $0x28] sm:$0xff]  ;;  %v1360_v21 = vld [vmem:[#allocation5] sm:$0xff] }
 0x40d   : > { %2355 = vpow2.f32 %v1259_v23  ;;  %v1284_v16 = vmul.f32 %v2984_v24, %v1268_v19  ;;  %v1271_v24 = vld [vmem:[#allocation4 + $0x40] sm:$0xff] }
 0x40e   : > { %v2354_v31 = vpop.eup %2353  ;;  %2357 = vpow2.f32 %v1255_v29  ;;  %v1287_v41 = vmul.f32 %v2946_v26, %v1271_v24 }
 0x40f   : > { %1313 = vadd.xlane.f32.xlu0 %v2352_v33  ;;  %1311 = vadd.xlane.f32.xlu1 %v2354_v31  ;;  %v1476_v34 = vpack.c.bf16 %v2352_v33, %v2354_v31  ;;  %2359 = vpow2.f32 %v1131_v59  ;;  %v1269_v33 = vld [vmem:[#allocation4 + $0x30] sm:$0xff]  ;;  %v1286_v31 = vmul.f32 %v2981_v20, %v1270_v14  ;;  %v1456_v14 = vmul.f32 %v3018_v58, %v1360_v21 }
 0x410   : > { %v3023_v8 = vpop.permute.xlu1 %1388  ;;  %v1273_v20 = vld [vmem:[#allocation4 + $0x50] sm:$0xff] }
 0x411   : > { %2208 = vmatmul.mubr.bf16.gmra.mxu0 %v1475_v52  ;;  %v1285_v52 = vmul.f32 %v2940_v12, %v1269_v33  ;;  %v1361_v33 = vld [vmem:[#allocation5 + $0x8] sm:$0xff] }
 0x412   : > { %2211 = vmatprep.mubr.bf16.mxu0 %v1476_v34 }
 0x419   : > { %2212 = vmatmul.mubr.bf16.gmra.mxu0 %v1477_v46 }
 0x41a   : > { %v2356_v45 = vpop.eup %2355 }
 0x41b   : > { %1323 = vadd.xlane.f32.xlu1 %v2356_v45  ;;  %v2358_v57 = vpop.eup %2357 }
 0x41c   : > { %v3013_v35 = vpop.eup %2359 }
 0x41f   : > { %1319 = vadd.xlane.f32.xlu1 %v2358_v57 }
 0x430   : > { %1448 = vperm.xlu1 %2294, %v3013_v35  }
 0x437   : > { %v1203_v62 = vpop.permute.xlu0 %1202 }
 0x438   : > { %v1228_v0 = vsub.f32 %v2802_v49, %v1203_v62  ;;  %v1133_v49 = vmul.f32 1.442695, %v1102_v50 }
 0x43a   : > { %v1257_v2 = vmul.f32 1.442695, %v1228_v0 }
 0x43b   : > { %v1213_v38 = vpop.permute.xlu0 %1212 }
 0x43c   : > { %2361 = vpow2.f32 %v1257_v2  ;;  %v1230_v36 = vsub.f32 %v2799_v47, %v1213_v38  ;;  %v3025_v47 = vpop.permute.xlu1 %1393  ;;  %v1274_v38 = vld [vmem:[#allocation4 + $0x58] sm:$0xff] }
 0x43e   : > { %v1261_v6 = vmul.f32 1.442695, %v1230_v36 }
 0x43f   : > { %v3027_v13 = vpop.permute.xlu0 %1383 }
 0x440   : > { %2363 = vpow2.f32 %v1261_v6  ;;  %v3029_v15 = vpop.permute.xlu1 %1398  ;;  %v1290_v6 = vmul.f32 %v2987_v61, %v1274_v38 }
 0x441   : > { %2365 = vpow2.f32 %v1133_v49 }
 0x443   : > { %v3031_v37 = vpop.permute.xlu0 %1413 }
 0x444   : > { %v3036_v43 = vpop.permute.xlu1 %1408 }
 0x447   : > { %v3038_v1 = vpop.permute.xlu0 %1403 }
 0x448   : > { %v3040_v30 = vpop.permute.xlu1 %1428 }
 0x449   : > { %v2362_v40 = vpop.eup %2361 }
 0x44a   : > { %v1478_v9 = vpack.c.bf16 %v2362_v40, %v2358_v57 }
 0x44b   : > { %v3042_v55 = vpop.permute.xlu0 %1433 }
 0x44c   : > { %2215 = vmatprep.mubr.bf16.mxu0 %v1478_v9  ;;  %v3044_v50 = vpop.permute.xlu1 %1418 }
 0x44d   : > { %v2364_v53 = vpop.eup %2363 }
 0x44e   : > { %1325 = vadd.xlane.f32.xlu0 %v2364_v53  ;;  %v1479_v54 = vpack.c.bf16 %v2364_v53, %v2356_v45  ;;  %v3033_v39 = vpop.eup %2365  ;;  %v1267_v45 = vld [vmem:[#allocation4 + $0x20] sm:$0xff] }
 0x44f   : > { %v3046_v4 = vpop.permute.xlu0 %1423  ;;  %v1283_v62 = vmul.f32 %v2937_v25, %v1267_v45 }
 0x450   : > { %2216 = vmatmul.mubr.bf16.gmra.mxu0 %v1479_v54  ;;  %v3048_v56 = vpop.permute.xlu1 %1438  ;;  %v1272_v54 = vld [vmem:[#allocation4 + $0x48] sm:$0xff] }
 0x451   : > { %v1288_v60 = vmul.f32 %v2990_v22, %v1272_v54  ;;  %v1276_v54 = vld [vmem:[#allocation4 + $0x68] sm:$0xff] }
 0x452   : > { %1321 = vadd.xlane.f32.xlu0 %v2362_v40  ;;  %v1289_v40 = vmul.f32 %v2943_v17, %v1273_v20  ;;  %v1277_v17 = vld [vmem:[#allocation4 + $0x70] sm:$0xff] }
 0x453   : > { %v3050_v51 = vpop.permute.xlu0 %1443 }
 0x468   : > { %1453 = vperm.xlu0 %2293, %v3033_v39  }
 0x480   : > { %v1300_v48 = vpop.xlane.xlu0 %1299  ;;  %v1296_v11 = vpop.xlane.xlu1 %1295 }
 0x481   : > { %v1329_v63 = vadd.f32 %v1300_v48, %v1281_v44  ;;  %v1327_v3 = vadd.f32 %v1296_v11, %v1279_v7  ;;  %v1293_v11 = vmul.f32 %v3013_v35, %v1277_v17 }
 0x483   : > { %1346 = vst.msk [vmem:[#allocation4 + $0x10] sm:$0xff] %vm1343_vm7, %v1329_v63  ;;  %1344 = vst.msk [vmem:[#allocation4] sm:$0xff] %vm1343_vm7, %v1327_v3  ;;  %v1275_v63 = vld [vmem:[#allocation4 + $0x60] sm:$0xff] }
 0x484   : > { %v1302_v18 = vpop.xlane.xlu0 %1301  ;;  %v1291_v22 = vmul.f32 %v2949_v27, %v1275_v63 }
 0x485   : > { %v1330_v32 = vadd.f32 %v1302_v18, %v1282_v5  ;;  %v1362_v18 = vld [vmem:[#allocation5 + $0x10] sm:$0xff] }
 0x487   : > { %1347 = vst.msk [vmem:[#allocation4 + $0x18] sm:$0xff] %vm1343_vm7, %v1330_v32  ;;  %v1458_v32 = vmul.f32 %v3023_v8, %v1362_v18  ;;  %v1364_v8 = vld [vmem:[#allocation5 + $0x20] sm:$0xff] }
 0x488   : > { %v1298_v23 = vpop.xlane.xlu0 %1297 }
 0x489   : > { %v1328_v29 = vadd.f32 %v1298_v23, %v1280_v10  ;;  %v1363_v10 = vld [vmem:[#allocation5 + $0x18] sm:$0xff] }
 0x48b   : > { %1345 = vst.msk [vmem:[#allocation4 + $0x8] sm:$0xff] %vm1343_vm7, %v1328_v29 }
 0x48c   : > { %v1310_v34 = vpop.xlane.xlu0 %1309  ;;  %v1308_v46 = vpop.xlane.xlu1 %1307 }
 0x48d   : > { %v1334_v57 = vadd.f32 %v1310_v34, %v1286_v31  ;;  %v1333_v59 = vadd.f32 %v1308_v46, %v1285_v52  ;;  %v1459_v31 = vmul.f32 %v3025_v47, %v1363_v10  ;;  %v1366_v52 = vld [vmem:[#allocation5 + $0x30] sm:$0xff]  ;;  %v1457_v46 = vmul.f32 %v3027_v13, %v1361_v33  ;;  %v1278_v13 = vld [vmem:[#allocation4 + $0x78] sm:$0xff]  ;;  %v1373_v10 = vld [vmem:[#allocation5 + $0x68] sm:$0xff] }
 0x48e   : > { %v1460_v47 = vmul.f32 %v3029_v15, %v1364_v8  ;;  %v1294_v15 = vmul.f32 %v3033_v39, %v1278_v13  ;;  %v1292_v39 = vmul.f32 %v2993_v28, %v1276_v54 }
 0x48f   : > { %1351 = vst.msk [vmem:[#allocation4 + $0x38] sm:$0xff] %vm1343_vm7, %v1334_v57  ;;  %1350 = vst.msk [vmem:[#allocation4 + $0x30] sm:$0xff] %vm1343_vm7, %v1333_v59  ;;  %v1462_v57 = vmul.f32 %v3036_v43, %v1366_v52  ;;  %v1367_v59 = vld [vmem:[#allocation5 + $0x38] sm:$0xff] }
 0x490   : > { %v1306_v0 = vpop.xlane.xlu0 %1305  ;;  %v1304_v2 = vpop.xlane.xlu1 %1303  ;;  %v1463_v38 = vmul.f32 %v3031_v37, %v1367_v59 }
 0x491   : > { %v1332_v36 = vadd.f32 %v1306_v0, %v1284_v16  ;;  %v1331_v12 = vadd.f32 %v1304_v2, %v1283_v62  ;;  %v1365_v0 = vld [vmem:[#allocation5 + $0x28] sm:$0xff] }
 0x493   : > { %1349 = vst.msk [vmem:[#allocation4 + $0x28] sm:$0xff] %vm1343_vm7, %v1332_v36  ;;  %1348 = vst.msk [vmem:[#allocation4 + $0x20] sm:$0xff] %vm1343_vm7, %v1331_v12  ;;  %v1370_v36 = vld [vmem:[#allocation5 + $0x50] sm:$0xff]  ;;  %v1461_v12 = vmul.f32 %v3038_v1, %v1365_v0 }
 0x494   : > { %v1318_v9 = vpop.xlane.xlu0 %1317  ;;  %v1316_v53 = vpop.xlane.xlu1 %1315  ;;  %v1466_v24 = vmul.f32 %v3040_v30, %v1370_v36 }
 0x495   : > { %v1338_v49 = vadd.f32 %v1318_v9, %v1290_v6  ;;  %v1337_v25 = vadd.f32 %v1316_v53, %v1289_v40  ;;  %v1368_v40 = vld [vmem:[#allocation5 + $0x40] sm:$0xff] }
 0x497   : > { %1355 = vst.msk [vmem:[#allocation4 + $0x58] sm:$0xff] %vm1343_vm7, %v1338_v49  ;;  %1354 = vst.msk [vmem:[#allocation4 + $0x50] sm:$0xff] %vm1343_vm7, %v1337_v25  ;;  %v1371_v25 = vld [vmem:[#allocation5 + $0x58] sm:$0xff] }
 0x498   : > { %v1314_v44 = vpop.xlane.xlu0 %1313  ;;  %v1312_v7 = vpop.xlane.xlu1 %1311  ;;  %v1467_v30 = vmul.f32 %v3042_v55, %v1371_v25 }
 0x499   : > { %v1336_v48 = vadd.f32 %v1314_v44, %v1288_v60  ;;  %v1335_v61 = vadd.f32 %v1312_v7, %v1287_v41  ;;  %v1464_v41 = vmul.f32 %v3044_v50, %v1368_v40  ;;  %v1369_v44 = vld [vmem:[#allocation5 + $0x48] sm:$0xff] }
 0x49b   : > { %1353 = vst.msk [vmem:[#allocation4 + $0x48] sm:$0xff] %vm1343_vm7, %v1336_v48  ;;  %1352 = vst.msk [vmem:[#allocation4 + $0x40] sm:$0xff] %vm1343_vm7, %v1335_v61 }
 0x4a4   : > { %v1324_v42 = vpop.xlane.xlu1 %1323 }
 0x4a5   : > { %v1341_v3 = vadd.f32 %v1324_v42, %v1293_v11  ;;  %v1465_v42 = vmul.f32 %v3046_v4, %v1369_v44 }
 0x4a7   : > { %1358 = vst.msk [vmem:[#allocation4 + $0x70] sm:$0xff] %vm1343_vm7, %v1341_v3  ;;  %v1374_v3 = vld [vmem:[#allocation5 + $0x70] sm:$0xff] }
 0x4a8   : > { %v1320_v5 = vpop.xlane.xlu1 %1319 }
 0x4a9   : > { %v1339_v26 = vadd.f32 %v1320_v5, %v1291_v22  ;;  %v1372_v22 = vld [vmem:[#allocation5 + $0x60] sm:$0xff] }
 0x4aa   : > { %v1468_v4 = vmul.f32 %v3048_v56, %v1372_v22 }
 0x4ab   : > { %1356 = vst.msk [vmem:[#allocation4 + $0x60] sm:$0xff] %vm1343_vm7, %v1339_v26  ;;  %v1375_v26 = vld [vmem:[#allocation5 + $0x78] sm:$0xff] }
 0x4ac   : > { %v1449_v55 = vpop.permute.xlu1 %1448 }
 0x4ad   : > { %v1470_v5 = vmul.f32 %v1449_v55, %v1374_v3 }
 0x4c9   : > { %v2205_v23 = vpop.f32.mrf.mxu0 }
 0x4ca   : > { %v1611_v35 = vadd.f32 %v2205_v23, %v1458_v32 }
 0x4cb   : > { %v1546_v29 = vpop.f32.mrf.mxu0 }
 0x4cc   : > { %1627 = vst.msk [vmem:[#allocation5 + $0x10] sm:$0xff] %vm687_vm5, %v1611_v35  ;;  %v1609_v27 = vadd.f32 %v1546_v29, %v1456_v14  ;;  %v1469_v29 = vmul.f32 %v3050_v51, %v1373_v10 }
 0x4cd   : > { %v2206_v34 = vpop.f32.mrf.mxu0 }
 0x4ce   : > { %1625 = vst.msk [vmem:[#allocation5] sm:$0xff] %vm687_vm5, %v1609_v27  ;;  %v1612_v19 = vadd.f32 %v2206_v34, %v1459_v31 }
 0x4cf   : > { %v1549_v45 = vpop.f32.mrf.mxu0 }
 0x4d0   : > { %1628 = vst.msk [vmem:[#allocation5 + $0x18] sm:$0xff] %vm687_vm5, %v1612_v19  ;;  %v1610_v58 = vadd.f32 %v1549_v45, %v1457_v46 }
 0x4d1   : > { %v2209_v16 = vpop.f32.mrf.mxu0 }
 0x4d2   : > { %1626 = vst.msk [vmem:[#allocation5 + $0x8] sm:$0xff] %vm687_vm5, %v1610_v58  ;;  %v1615_v62 = vadd.f32 %v2209_v16, %v1462_v57 }
 0x4d3   : > { %v1562_v2 = vpop.f32.mrf.mxu0 }
 0x4d4   : > { %1631 = vst.msk [vmem:[#allocation5 + $0x30] sm:$0xff] %vm687_vm5, %v1615_v62  ;;  %v1613_v20 = vadd.f32 %v1562_v2, %v1460_v47 }
 0x4d5   : > { %v2210_v43 = vpop.f32.mrf.mxu0 }
 0x4d6   : > { %1629 = vst.msk [vmem:[#allocation5 + $0x20] sm:$0xff] %vm687_vm5, %v1613_v20  ;;  %v1616_v6 = vadd.f32 %v2210_v43, %v1463_v38 }
 0x4d7   : > { %v1326_v9 = vpop.xlane.xlu0 %1325  ;;  %v1565_v53 = vpop.f32.mrf.mxu0 }
 0x4d8   : > { %1632 = vst.msk [vmem:[#allocation5 + $0x38] sm:$0xff] %vm687_vm5, %v1616_v6  ;;  %v1342_v37 = vadd.f32 %v1326_v9, %v1294_v15  ;;  %v1614_v49 = vadd.f32 %v1565_v53, %v1461_v12 }
 0x4d9   : > { %v2213_v60 = vpop.f32.mrf.mxu0 }
 0x4da   : > { %1359 = vst.msk [vmem:[#allocation4 + $0x78] sm:$0xff] %vm1343_vm7, %v1342_v37  ;;  %v1619_v1 = vadd.f32 %v2213_v60, %v1466_v24 }
 0x4db   : > { %1630 = vst.msk [vmem:[#allocation5 + $0x28] sm:$0xff] %vm687_vm5, %v1614_v49  ;;  %v1322_v7 = vpop.xlane.xlu0 %1321  ;;  %v1578_v48 = vpop.f32.mrf.mxu0 }
 0x4dc   : > { %1635 = vst.msk [vmem:[#allocation5 + $0x50] sm:$0xff] %vm687_vm5, %v1619_v1  ;;  %v1340_v61 = vadd.f32 %v1322_v7, %v1292_v39  ;;  %v1617_v17 = vadd.f32 %v1578_v48, %v1464_v41 }
 0x4dd   : > { %v2214_v11 = vpop.f32.mrf.mxu0 }
 0x4de   : > { %1357 = vst.msk [vmem:[#allocation4 + $0x68] sm:$0xff] %vm1343_vm7, %v1340_v61  ;;  %v1620_v50 = vadd.f32 %v2214_v11, %v1467_v30 }
 0x4df   : > { %1633 = vst.msk [vmem:[#allocation5 + $0x40] sm:$0xff] %vm687_vm5, %v1617_v17  ;;  %v1581_v63 = vpop.f32.mrf.mxu0 }
 0x4e0   : > { %1636 = vst.msk [vmem:[#allocation5 + $0x58] sm:$0xff] %vm687_vm5, %v1620_v50  ;;  %v1618_v28 = vadd.f32 %v1581_v63, %v1465_v42 }
 0x4e2   : > { %1634 = vst.msk [vmem:[#allocation5 + $0x48] sm:$0xff] %vm687_vm5, %v1618_v28 }
 0x4e3   : > { %v1454_v18 = vpop.permute.xlu0 %1453 }
 0x4e4   : > { %v1471_v14 = vmul.f32 %v1454_v18, %v1375_v26 }
 0x510   : > { %v2217_v21 = vpop.f32.mrf.mxu0 }
 0x511   : > { %v1623_v32 = vadd.f32 %v2217_v21, %v1470_v5 }
 0x512   : > { %v1594_v23 = vpop.f32.mrf.mxu0 }
 0x513   : > { %1639 = vst.msk [vmem:[#allocation5 + $0x70] sm:$0xff] %vm687_vm5, %v1623_v32  ;;  %v1621_v35 = vadd.f32 %v1594_v23, %v1468_v4 }
 0x514   : > { %v2218_v33 = vpop.f32.mrf.mxu0 }
 0x515   : > { %1637 = vst.msk [vmem:[#allocation5 + $0x60] sm:$0xff] %vm687_vm5, %v1621_v35  ;;  %v1624_v31 = vadd.f32 %v2218_v33, %v1471_v14  ;;  %1660 = sbr.rel (%p2050_p10) target bundleno = 1481 (0x5c9), region = 56 }
 0x516   : > { %v1597_v27 = vpop.f32.mrf.mxu0 }
 0x517   : > { %1640 = vst.msk [vmem:[#allocation5 + $0x78] sm:$0xff] %vm687_vm5, %v1624_v31  ;;  %v1622_v52 = vadd.f32 %v1597_v27, %v1469_v29 }
 0x519   : > { %1638 = vst.msk [vmem:[#allocation5 + $0x68] sm:$0xff] %vm687_vm5, %v1622_v52 }
 0x51a   : > { %v1663_v56 = vld [vmem:[#allocation4 + $0x10] sm:$0xff]  ;;  %v1661_v34 = vld [vmem:[#allocation4] sm:$0xff]  ;;  %v1664_v46 = vld [vmem:[#allocation4 + $0x18] sm:$0xff]  ;;  %v2461_v19 = vmov 0   ;;  %v3115_v44 = vstv %s1805_s26 }
 0x51b   : > { %2368 = vset.pattern.permute.xlu1 %v2461_v19  ;;  %2367 = vset.pattern.permute.xlu0 %v2461_v19  ;;  %2369 = vrcp.f32 %v1663_v56  ;;  %v1662_v51 = vld [vmem:[#allocation4 + $0x8] sm:$0xff]  ;;  %v1665_v45 = vld [vmem:[#allocation4 + $0x20] sm:$0xff]  ;;  %v1668_v57 = vld [vmem:[#allocation4 + $0x38] sm:$0xff] }
 0x51c   : > { %2371 = vrcp.f32 %v1661_v34  ;;  %v1666_v8 = vld [vmem:[#allocation4 + $0x28] sm:$0xff]  ;;  %v1667_v58 = vld [vmem:[#allocation4 + $0x30] sm:$0xff]  ;;  %v1669_v16 = vld [vmem:[#allocation4 + $0x40] sm:$0xff] }
 0x51d   : > { %2373 = vrcp.f32 %v1664_v46  ;;  %v1670_v59 = vld [vmem:[#allocation4 + $0x48] sm:$0xff]  ;;  %v1672_v2 = vld [vmem:[#allocation4 + $0x58] sm:$0xff]  ;;  %v1671_v38 = vld [vmem:[#allocation4 + $0x50] sm:$0xff] }
 0x51e   : > { %2375 = vrcp.f32 %v1662_v51  ;;  %v1674_v36 = vld [vmem:[#allocation4 + $0x68] sm:$0xff]  ;;  %v1673_v12 = vld [vmem:[#allocation4 + $0x60] sm:$0xff]  ;;  %v1676_v15 = vld [vmem:[#allocation4 + $0x78] sm:$0xff] }
 0x51f   : > { %2377 = vrcp.f32 %v1666_v8  ;;  %v1675_v9 = vld [vmem:[#allocation4 + $0x70] sm:$0xff]  ;;  %v1693_v39 = vld [vmem:[#allocation5] sm:$0xff]  ;;  %v1696_v11 = vld [vmem:[#allocation5 + $0x18] sm:$0xff] }
 0x520   : > { %2379 = vrcp.f32 %v1665_v45  ;;  %v1695_v1 = vld [vmem:[#allocation5 + $0x10] sm:$0xff]  ;;  %v1823_v50 = vld [vmem:[%s2553_s19] sm:$0xff]  ;;  %v1694_v63 = vld [vmem:[#allocation5 + $0x8] sm:$0xff] }
 0x521   : > { %2381 = vrcp.f32 %v1668_v57  ;;  %v1825_v61 = vld [vmem:[%s2553_s19 + $0x10] sm:$0xff]  ;;  %v1826_v18 = vld [vmem:[%s2553_s19 + $0x18] sm:$0xff]  ;;  %v1698_v4 = vld [vmem:[#allocation5 + $0x28] sm:$0xff] }
 0x522   : > { %2383 = vrcp.f32 %v1667_v58  ;;  %v1824_v10 = vld [vmem:[%s2553_s19 + $0x8] sm:$0xff]  ;;  %v1697_v23 = vld [vmem:[#allocation5 + $0x20] sm:$0xff]  ;;  %v1700_v34 = vld [vmem:[#allocation5 + $0x38] sm:$0xff] }
 0x523   : > { %2385 = vrcp.f32 %v1670_v59  ;;  %v1828_v52 = vld [vmem:[%s2553_s19 + $0x28] sm:$0xff]  ;;  %v1827_v19 = vld [vmem:[%s2553_s19 + $0x20] sm:$0xff]  ;;  %v1699_v51 = vld [vmem:[#allocation5 + $0x30] sm:$0xff] }
 0x524   : > { %2387 = vrcp.f32 %v1669_v16 }
 0x525   : > { %2389 = vrcp.f32 %v1672_v2 }
 0x526   : > { %2391 = vrcp.f32 %v1671_v38  ;;  %v1701_v38 = vld [vmem:[#allocation5 + $0x40] sm:$0xff] }
 0x527   : > { %2393 = vrcp.f32 %v1674_v36 }
 0x528   : > { %v2370_v47 = vpop.eup %2369  ;;  %2395 = vrcp.f32 %v1673_v12 }
 0x529   : > { %v2372_v62 = vpop.eup %2371  ;;  %1721 = vperm.xlu1 %2368, %v2370_v47   ;;  %2397 = vrcp.f32 %v1676_v15  ;;  %v1830_v47 = vld [vmem:[%s2553_s19 + $0x38] sm:$0xff] }
 0x52a   : > { %v2374_v0 = vpop.eup %2373  ;;  %1711 = vperm.xlu0 %2367, %v2372_v62   ;;  %2399 = vrcp.f32 %v1675_v9 }
 0x52b   : > { %v2376_v13 = vpop.eup %2375 }
 0x52c   : > { %v2378_v20 = vpop.eup %2377 }
 0x52d   : > { %1726 = vperm.xlu1 %2368, %v2374_v0   ;;  %v2380_v43 = vpop.eup %2379  ;;  %v1702_v0 = vld [vmem:[#allocation5 + $0x48] sm:$0xff] }
 0x52e   : > { %1716 = vperm.xlu0 %2367, %v2376_v13   ;;  %v2382_v6 = vpop.eup %2381  ;;  %v1829_v13 = vld [vmem:[%s2553_s19 + $0x30] sm:$0xff] }
 0x52f   : > { %v2384_v40 = vpop.eup %2383 }
 0x530   : > { %v2386_v53 = vpop.eup %2385 }
 0x531   : > { %1736 = vperm.xlu1 %2368, %v2378_v20   ;;  %v2388_v54 = vpop.eup %2387 }
 0x532   : > { %1731 = vperm.xlu0 %2367, %v2380_v43   ;;  %v2390_v24 = vpop.eup %2389 }
 0x533   : > { %v2392_v37 = vpop.eup %2391 }
 0x534   : > { %v2394_v49 = vpop.eup %2393 }
 0x535   : > { %1746 = vperm.xlu1 %2368, %v2382_v6   ;;  %v2396_v25 = vpop.eup %2395 }
 0x536   : > { %1741 = vperm.xlu0 %2367, %v2384_v40   ;;  %v2398_v60 = vpop.eup %2397  ;;  %v1832_v40 = vld [vmem:[%s2553_s19 + $0x48] sm:$0xff] }
 0x537   : > { %v2400_v41 = vpop.eup %2399 }
 0x539   : > { %1756 = vperm.xlu1 %2368, %v2386_v53   ;;  %v1704_v53 = vld [vmem:[#allocation5 + $0x58] sm:$0xff] }
 0x53a   : > { %1751 = vperm.xlu0 %2367, %v2388_v54  }
 0x53d   : > { %1766 = vperm.xlu1 %2368, %v2390_v24   ;;  %v1831_v24 = vld [vmem:[%s2553_s19 + $0x40] sm:$0xff] }
 0x53e   : > { %1761 = vperm.xlu0 %2367, %v2392_v37   ;;  %v1703_v37 = vld [vmem:[#allocation5 + $0x50] sm:$0xff] }
 0x541   : > { %1776 = vperm.xlu1 %2368, %v2394_v49  }
 0x542   : > { %1771 = vperm.xlu0 %2367, %v2396_v25  }
 0x545   : > { %1786 = vperm.xlu1 %2368, %v2398_v60  }
 0x546   : > { %1781 = vperm.xlu0 %2367, %v2400_v41  }
 0x5a4   : > { %v1722_v7 = vpop.permute.xlu1 %1721 }
 0x5a5   : > { %v1791_v48 = vmul.f32 %v1722_v7, %v1695_v1  ;;  %v1712_v30 = vpop.permute.xlu0 %1711  ;;  %v1834_v7 = vld [vmem:[%s2553_s19 + $0x58] sm:$0xff] }
 0x5a6   : > { %v1789_v17 = vmul.f32 %v1712_v30, %v1693_v39  ;;  %v1706_v30 = vld [vmem:[#allocation5 + $0x68] sm:$0xff] }
 0x5a7   : > { %v1809_v42 = vmul.f32 %v3115_v44, %v1791_v48 }
 0x5a8   : > { %v1807_v28 = vmul.f32 %v3115_v44, %v1789_v17  ;;  %v1727_v3 = vpop.permute.xlu1 %1726  ;;  %v1833_v17 = vld [vmem:[%s2553_s19 + $0x50] sm:$0xff] }
 0x5a9   : > { %v1841_v55 = vadd.f32 %v1825_v61, %v1809_v42  ;;  %v1792_v22 = vmul.f32 %v1727_v3, %v1696_v11  ;;  %v1717_v5 = vpop.permute.xlu0 %1716  ;;  %v1705_v11 = vld [vmem:[#allocation5 + $0x60] sm:$0xff] }
 0x5aa   : > { %v1839_v26 = vadd.f32 %v1823_v50, %v1807_v28  ;;  %v1790_v21 = vmul.f32 %v1717_v5, %v1694_v63 }
 0x5ab   : > { %1857 = vst.msk [vmem:[%s2558_s22 + $0x10] sm:$0xff] %vm687_vm5, %v1841_v55  ;;  %v1810_v32 = vmul.f32 %v3115_v44, %v1792_v22  ;;  %v1836_v22 = vld [vmem:[%s2553_s19 + $0x68] sm:$0xff] }
 0x5ac   : > { %1855 = vst.msk [vmem:[%s2558_s22] sm:$0xff] %vm687_vm5, %v1839_v26  ;;  %v1808_v14 = vmul.f32 %v3115_v44, %v1790_v21  ;;  %v1737_v35 = vpop.permute.xlu1 %1736  ;;  %v1708_v26 = vld [vmem:[#allocation5 + $0x78] sm:$0xff]  ;;  %v1835_v21 = vld [vmem:[%s2553_s19 + $0x60] sm:$0xff] }
 0x5ad   : > { %v1842_v33 = vadd.f32 %v1826_v18, %v1810_v32  ;;  %v1794_v29 = vmul.f32 %v1737_v35, %v1698_v4  ;;  %v1732_v31 = vpop.permute.xlu0 %1731  ;;  %v1707_v4 = vld [vmem:[#allocation5 + $0x70] sm:$0xff] }
 0x5ae   : > { %v1840_v27 = vadd.f32 %v1824_v10, %v1808_v14  ;;  %v1793_v56 = vmul.f32 %v1732_v31, %v1697_v23 }
 0x5af   : > { %1858 = vst.msk [vmem:[%s2558_s22 + $0x18] sm:$0xff] %vm687_vm5, %v1842_v33  ;;  %v1812_v46 = vmul.f32 %v3115_v44, %v1794_v29  ;;  %v1838_v29 = vld [vmem:[%s2553_s19 + $0x78] sm:$0xff] }
 0x5b0   : > { %1856 = vst.msk [vmem:[%s2558_s22 + $0x8] sm:$0xff] %vm687_vm5, %v1840_v27  ;;  %v1811_v8 = vmul.f32 %v3115_v44, %v1793_v56  ;;  %v1747_v45 = vpop.permute.xlu1 %1746 }
 0x5b1   : > { %v1844_v57 = vadd.f32 %v1828_v52, %v1812_v46  ;;  %v1796_v58 = vmul.f32 %v1747_v45, %v1700_v34  ;;  %v1742_v59 = vpop.permute.xlu0 %1741  ;;  %v1837_v52 = vld [vmem:[%s2553_s19 + $0x70] sm:$0xff] }
 0x5b2   : > { %v1843_v16 = vadd.f32 %v1827_v19, %v1811_v8  ;;  %v1795_v62 = vmul.f32 %v1742_v59, %v1699_v51 }
 0x5b3   : > { %1860 = vst.msk [vmem:[%s2558_s22 + $0x28] sm:$0xff] %vm687_vm5, %v1844_v57  ;;  %v1814_v2 = vmul.f32 %v3115_v44, %v1796_v58 }
 0x5b4   : > { %1859 = vst.msk [vmem:[%s2558_s22 + $0x20] sm:$0xff] %vm687_vm5, %v1843_v16  ;;  %v1813_v20 = vmul.f32 %v3115_v44, %v1795_v62  ;;  %v1757_v36 = vpop.permute.xlu1 %1756 }
 0x5b5   : > { %v1846_v43 = vadd.f32 %v1830_v47, %v1814_v2  ;;  %v1798_v12 = vmul.f32 %v1757_v36, %v1702_v0  ;;  %v1752_v6 = vpop.permute.xlu0 %1751 }
 0x5b6   : > { %v1845_v15 = vadd.f32 %v1829_v13, %v1813_v20  ;;  %v1797_v9 = vmul.f32 %v1752_v6, %v1701_v38 }
 0x5b7   : > { %1862 = vst.msk [vmem:[%s2558_s22 + $0x38] sm:$0xff] %vm687_vm5, %v1846_v43  ;;  %v1816_v54 = vmul.f32 %v3115_v44, %v1798_v12 }
 0x5b8   : > { %1861 = vst.msk [vmem:[%s2558_s22 + $0x30] sm:$0xff] %vm687_vm5, %v1845_v15  ;;  %v1815_v49 = vmul.f32 %v3115_v44, %v1797_v9  ;;  %v1767_v25 = vpop.permute.xlu1 %1766 }
 0x5b9   : > { %v1848_v60 = vadd.f32 %v1832_v40, %v1816_v54  ;;  %v1800_v41 = vmul.f32 %v1767_v25, %v1704_v53  ;;  %v1762_v1 = vpop.permute.xlu0 %1761 }
 0x5ba   : > { %v1847_v39 = vadd.f32 %v1831_v24, %v1815_v49  ;;  %v1799_v48 = vmul.f32 %v1762_v1, %v1703_v37 }
 0x5bb   : > { %1864 = vst.msk [vmem:[%s2558_s22 + $0x48] sm:$0xff] %vm687_vm5, %v1848_v60  ;;  %v1818_v61 = vmul.f32 %v3115_v44, %v1800_v41 }
 0x5bc   : > { %1863 = vst.msk [vmem:[%s2558_s22 + $0x40] sm:$0xff] %vm687_vm5, %v1847_v39  ;;  %v1817_v42 = vmul.f32 %v3115_v44, %v1799_v48  ;;  %v1777_v50 = vpop.permute.xlu1 %1776 }
 0x5bd   : > { %v1850_v63 = vadd.f32 %v1834_v7, %v1818_v61  ;;  %v1802_v28 = vmul.f32 %v1777_v50, %v1706_v30  ;;  %v1772_v3 = vpop.permute.xlu0 %1771 }
 0x5be   : > { %v1849_v55 = vadd.f32 %v1833_v17, %v1817_v42  ;;  %v1801_v5 = vmul.f32 %v1772_v3, %v1705_v11 }
 0x5bf   : > { %1866 = vst.msk [vmem:[%s2558_s22 + $0x58] sm:$0xff] %vm687_vm5, %v1850_v63  ;;  %v1820_v18 = vmul.f32 %v3115_v44, %v1802_v28 }
 0x5c0   : > { %1865 = vst.msk [vmem:[%s2558_s22 + $0x50] sm:$0xff] %vm687_vm5, %v1849_v55  ;;  %v1819_v32 = vmul.f32 %v3115_v44, %v1801_v5  ;;  %v1787_v10 = vpop.permute.xlu1 %1786 }
 0x5c1   : > { %v1852_v23 = vadd.f32 %v1836_v22, %v1820_v18  ;;  %v1804_v14 = vmul.f32 %v1787_v10, %v1708_v26  ;;  %v1782_v35 = vpop.permute.xlu0 %1781 }
 0x5c2   : > { %v1851_v33 = vadd.f32 %v1835_v21, %v1819_v32  ;;  %v1803_v31 = vmul.f32 %v1782_v35, %v1707_v4 }
 0x5c3   : > { %1868 = vst.msk [vmem:[%s2558_s22 + $0x68] sm:$0xff] %vm687_vm5, %v1852_v23  ;;  %v1822_v27 = vmul.f32 %v3115_v44, %v1804_v14 }
 0x5c4   : > { %1867 = vst.msk [vmem:[%s2558_s22 + $0x60] sm:$0xff] %vm687_vm5, %v1851_v33  ;;  %v1821_v56 = vmul.f32 %v3115_v44, %v1803_v31 }
 0x5c5   : > { %v1854_v34 = vadd.f32 %v1838_v29, %v1822_v27 }
 0x5c6   : > { %v1853_v46 = vadd.f32 %v1837_v52, %v1821_v56 }
 0x5c7   : > { %1870 = vst.msk [vmem:[%s2558_s22 + $0x78] sm:$0xff] %vm687_vm5, %v1854_v34 }
 0x5c8   : > { %1869 = vst.msk [vmem:[%s2558_s22 + $0x70] sm:$0xff] %vm687_vm5, %v1853_v46 }
 0x5c9 PF: > { %s18_s9 = sadd.s32 1, %s2455_s9   ;;  %s3210_s26 = smov %s2443_s29 }
 0x5ca   : > { %p15_p11 = scmp.ge.s32.totalorder %s18_s9, 10   ;;  %s3211_s27 = smov %s2447_s30 }
 0x5cb   : > { %s3212_s28 = smov %s2451_s8  ;;  %s3213_s29 = smov %s3217_s6 }
 0x5cc   : > { %s3214_s30 = smov %s3221_s10  ;;  %s3215_s8 = smov %s3225_s11 }
 0x5cd   :  { %17 = sbr.rel (!%p15_p11) target bundleno = 4 (0x4), region = 89 }

</bundles_post_ra>
